<compile_context>
chip_gen: v7x
topology: tpu7x:2x2x1
jax: 0.10.0
libtpu: 0.0.40
codegen_flags: <defaults>
</compile_context>

<pallas_src>
import functools
import math

import jax
import jax.numpy as jnp
import numpy as np
from jax import lax
from jax.experimental import pallas as pl
from jax.experimental.pallas import tpu as pltpu

# ---------------- CADM config (constructor args) ----------------
D_MODEL = 256          # d_model (pos_text sine embedding hard-coded to 256 feats)
TEXT_NHEAD = 4         # text_nhead
TEXT_DFF = 256         # text_dim_feedforward (= fusion embed_dim and text FFN width)
DFF = 512              # dim_feedforward (vision deformable-layer FFN width)
N_LEVELS = 2           # num_feature_levels
NHEAD = 4              # nhead (deformable attention heads)
N_POINTS = 4           # enc_n_points
LN_EPS = 1e-5
NEG_INF = -1e30        # stand-in for float('-inf') masked_fill (same result after softmax)

_VMEM_LIMIT = 40 * 1024 * 1024   # > default 32 MiB scoped, < v7x 64 MiB physical
_CP1 = pltpu.CompilerParams(dimension_semantics=("parallel",),
                            vmem_limit_bytes=_VMEM_LIMIT)


# ============================= tiling helper =============================

def _pick_tm(m, target=512):
    """Row-tile size: <= target, multiple of 8, and >= 2 tiles whenever possible so the
    pipeline double-buffers and both v7x TensorCores get work."""
    if m <= 8:
        return m
    if m > target:
        return target
    half = (((m + 1) // 2) + 7) // 8 * 8
    return max(8, min(m, half))


# ============================= linear-family Pallas kernels =============================

def _linear_kernel(x_ref, w_ref, b_ref, o_ref, *, act):
    x = x_ref[...].astype(jnp.bfloat16)
    y = jnp.dot(x, w_ref[...], preferred_element_type=jnp.float32) + b_ref[...]
    if act == "relu":
        y = jnp.maximum(y, 0.0)
    o_ref[...] = y


def pallas_linear(x, w, b, act=None):
    M, K = x.shape
    N = w.shape[1]
    tm = _pick_tm(M)
    return pl.pallas_call(
        functools.partial(_linear_kernel, act=act),
        out_shape=jax.ShapeDtypeStruct((M, N), jnp.float32),
        grid=(pl.cdiv(M, tm),),
        in_specs=[
            pl.BlockSpec((tm, K), lambda i: (i, 0)),
            pl.BlockSpec((K, N), lambda i: (0, 0)),    # weight resident across tiles
            pl.BlockSpec((1, N), lambda i: (0, 0)),
        ],
        out_specs=pl.BlockSpec((tm, N), lambda i: (i, 0)),
        compiler_params=_CP1,
    )(x, w, b.reshape(1, N))


def _add_linear_kernel(x_ref, r_ref, w_ref, b_ref, o_ref, *, act):
    x = (x_ref[...] + r_ref[...]).astype(jnp.bfloat16)
    y = jnp.dot(x, w_ref[...], preferred_element_type=jnp.float32) + b_ref[...]
    if act == "relu":
        y = jnp.maximum(y, 0.0)
    o_ref[...] = y


def pallas_add_linear(x, r, w, b, act=None):
    """(x + r) @ w + b   (pos-embed add fused into the projection)."""
    M, K = x.shape
    N = w.shape[1]
    tm = _pick_tm(M)
    return pl.pallas_call(
        functools.partial(_add_linear_kernel, act=act),
        out_shape=jax.ShapeDtypeStruct((M, N), jnp.float32),
        grid=(pl.cdiv(M, tm),),
        in_specs=[
            pl.BlockSpec((tm, K), lambda i: (i, 0)),
            pl.BlockSpec((tm, K), lambda i: (i, 0)),
            pl.BlockSpec((K, N), lambda i: (0, 0)),
            pl.BlockSpec((1, N), lambda i: (0, 0)),
        ],
        out_specs=pl.BlockSpec((tm, N), lambda i: (i, 0)),
        compiler_params=_CP1,
    )(x, r, w, b.reshape(1, N))


def _linear_res_gamma_kernel(x_ref, w_ref, b_ref, r_ref, g_ref, o_ref):
    x = x_ref[...].astype(jnp.bfloat16)
    y = jnp.dot(x, w_ref[...], preferred_element_type=jnp.float32) + b_ref[...]
    o_ref[...] = r_ref[...] + g_ref[...] * y


def pallas_linear_res_gamma(x, w, b, res, gamma):
    """res + gamma * (x @ w + b)   (out-projection + layer-scale residual fused)."""
    M, K = x.shape
    N = w.shape[1]
    tm = _pick_tm(M)
    return pl.pallas_call(
        _linear_res_gamma_kernel,
        out_shape=jax.ShapeDtypeStruct((M, N), jnp.float32),
        grid=(pl.cdiv(M, tm),),
        in_specs=[
            pl.BlockSpec((tm, K), lambda i: (i, 0)),
            pl.BlockSpec((K, N), lambda i: (0, 0)),
            pl.BlockSpec((1, N), lambda i: (0, 0)),
            pl.BlockSpec((tm, N), lambda i: (i, 0)),
            pl.BlockSpec((1, N), lambda i: (0, 0)),
        ],
        out_specs=pl.BlockSpec((tm, N), lambda i: (i, 0)),
        compiler_params=_CP1,
    )(x, w, b.reshape(1, N), res, gamma.reshape(1, N))


def _ln_linear_kernel(x_ref, g_ref, bln_ref, w_ref, b_ref, y_ref, xn_ref, *, act, eps):
    x = x_ref[...]
    mu = jnp.mean(x, axis=-1, keepdims=True)
    xc = x - mu
    var = jnp.mean(xc * xc, axis=-1, keepdims=True)
    xn = xc * jax.lax.rsqrt(var + eps) * g_ref[...] + bln_ref[...]
    xn_ref[...] = xn
    y = jnp.dot(xn.astype(jnp.bfloat16), w_ref[...],
                preferred_element_type=jnp.float32) + b_ref[...]
    if act == "relu":
        y = jnp.maximum(y, 0.0)
    y_ref[...] = y


def pallas_ln_linear(x, g, bln, w, b, act=None):
    """Fused LayerNorm -> Linear; also returns the normalized input (needed as residual)."""
    M, K = x.shape
    N = w.shape[1]
    tm = _pick_tm(M)
    return pl.pallas_call(
        functools.partial(_ln_linear_kernel, act=act, eps=LN_EPS),
        out_shape=(jax.ShapeDtypeStruct((M, N), jnp.float32),
                   jax.ShapeDtypeStruct((M, K), jnp.float32)),
        grid=(pl.cdiv(M, tm),),
        in_specs=[
            pl.BlockSpec((tm, K), lambda i: (i, 0)),
            pl.BlockSpec((1, K), lambda i: (0, 0)),
            pl.BlockSpec((1, K), lambda i: (0, 0)),
            pl.BlockSpec((K, N), lambda i: (0, 0)),
            pl.BlockSpec((1, N), lambda i: (0, 0)),
        ],
        out_specs=(pl.BlockSpec((tm, N), lambda i: (i, 0)),
                   pl.BlockSpec((tm, K), lambda i: (i, 0))),
        compiler_params=_CP1,
    )(x, g.reshape(1, K), bln.reshape(1, K), w, b.reshape(1, N))


def _add_ln_linear_kernel(x_ref, r_ref, g_ref, bln_ref, w_ref, b_ref, y_ref, sn_ref,
                          *, act, eps):
    s = x_ref[...] + r_ref[...]
    mu = jnp.mean(s, axis=-1, keepdims=True)
    sc = s - mu
    var = jnp.mean(sc * sc, axis=-1, keepdims=True)
    sn = sc * jax.lax.rsqrt(var + eps) * g_ref[...] + bln_ref[...]
    sn_ref[...] = sn
    y = jnp.dot(sn.astype(jnp.bfloat16), w_ref[...],
                preferred_element_type=jnp.float32) + b_ref[...]
    if act == "relu":
        y = jnp.maximum(y, 0.0)
    y_ref[...] = y


def pallas_add_ln_linear(x, r, g, bln, w, b, act=None):
    """Fused residual-add -> LayerNorm -> Linear; also returns the normalized sum."""
    M, K = x.shape
    N = w.shape[1]
    tm = _pick_tm(M)
    return pl.pallas_call(
        functools.partial(_add_ln_linear_kernel, act=act, eps=LN_EPS),
        out_shape=(jax.ShapeDtypeStruct((M, N), jnp.float32),
                   jax.ShapeDtypeStruct((M, K), jnp.float32)),
        grid=(pl.cdiv(M, tm),),
        in_specs=[
            pl.BlockSpec((tm, K), lambda i: (i, 0)),
            pl.BlockSpec((tm, K), lambda i: (i, 0)),
            pl.BlockSpec((1, K), lambda i: (0, 0)),
            pl.BlockSpec((1, K), lambda i: (0, 0)),
            pl.BlockSpec((K, N), lambda i: (0, 0)),
            pl.BlockSpec((1, N), lambda i: (0, 0)),
        ],
        out_specs=(pl.BlockSpec((tm, N), lambda i: (i, 0)),
                   pl.BlockSpec((tm, K), lambda i: (i, 0))),
        compiler_params=_CP1,
    )(x, r, g.reshape(1, K), bln.reshape(1, K), w, b.reshape(1, N))


def _linear_add_ln_kernel(x_ref, w_ref, b_ref, r_ref, g_ref, bln_ref, o_ref, *, eps):
    x = x_ref[...].astype(jnp.bfloat16)
    y = jnp.dot(x, w_ref[...], preferred_element_type=jnp.float32) + b_ref[...]
    s = r_ref[...] + y
    mu = jnp.mean(s, axis=-1, keepdims=True)
    sc = s - mu
    var = jnp.mean(sc * sc, axis=-1, keepdims=True)
    o_ref[...] = sc * jax.lax.rsqrt(var + eps) * g_ref[...] + bln_ref[...]


def pallas_linear_add_ln(x, w, b, res, g, bln):
    """Fused Linear -> residual add -> LayerNorm (FFN second half + norm2)."""
    M, K = x.shape
    N = w.shape[1]
    tm = _pick_tm(M)
    return pl.pallas_call(
        functools.partial(_linear_add_ln_kernel, eps=LN_EPS),
        out_shape=jax.ShapeDtypeStruct((M, N), jnp.float32),
        grid=(pl.cdiv(M, tm),),
        in_specs=[
            pl.BlockSpec((tm, K), lambda i: (i, 0)),
            pl.BlockSpec((K, N), lambda i: (0, 0)),
            pl.BlockSpec((1, N), lambda i: (0, 0)),
            pl.BlockSpec((tm, N), lambda i: (i, 0)),
            pl.BlockSpec((1, N), lambda i: (0, 0)),
            pl.BlockSpec((1, N), lambda i: (0, 0)),
        ],
        out_specs=pl.BlockSpec((tm, N), lambda i: (i, 0)),
        compiler_params=_CP1,
    )(x, w, b.reshape(1, N), res, g.reshape(1, N), bln.reshape(1, N))


# ============================= attention Pallas kernels =============================

def _softmax_rows(s):
    s = s - jnp.max(s, axis=-1, keepdims=True)
    p = jnp.exp(s)
    return p * pl.reciprocal(jnp.sum(p, axis=-1, keepdims=True), approx=True)


def _text_attn_kernel(q_ref, k_ref, v_ref, m_ref, o_ref, *, nhead):
    # Per-batch kernel; heads looped inside, single lane-dense (Lt, E) store.
    E = q_ref.shape[2]
    dh = E // nhead
    q = q_ref[0].astype(jnp.bfloat16)        # scale pre-folded into the q-projection
    k = k_ref[0].astype(jnp.bfloat16)
    v = v_ref[0].astype(jnp.bfloat16)
    outs = []
    for h in range(nhead):
        lo = h * dh
        qh, kh, vh = q[:, lo:lo + dh], k[:, lo:lo + dh], v[:, lo:lo + dh]
        s = lax.dot_general(qh, kh, (((1,), (1,)), ((), ())),
                            preferred_element_type=jnp.float32)
        s = s + jnp.where(m_ref[0, h] != 0, NEG_INF, 0.0)
        p = _softmax_rows(s)
        outs.append(jnp.dot(p.astype(jnp.bfloat16), vh,
                            preferred_element_type=jnp.float32))
    o_ref[0] = jnp.concatenate(outs, axis=-1)


def pallas_text_attn(q, k, v, mask_bh):
    bs, Lt, E = q.shape
    H = mask_bh.shape[1]
    return pl.pallas_call(
        functools.partial(_text_attn_kernel, nhead=H),
        out_shape=jax.ShapeDtypeStruct((bs, Lt, E), jnp.float32),
        grid=(bs,),
        in_specs=[
            pl.BlockSpec((1, Lt, E), lambda i: (i, 0, 0)),
            pl.BlockSpec((1, Lt, E), lambda i: (i, 0, 0)),
            pl.BlockSpec((1, Lt, E), lambda i: (i, 0, 0)),
            pl.BlockSpec((1, H, Lt, Lt), lambda i: (i, 0, 0, 0)),
        ],
        out_specs=pl.BlockSpec((1, Lt, E), lambda i: (i, 0, 0)),
        compiler_params=_CP1,
    )(q, k, v, mask_bh)


def _biattn_kernel(q_ref, k_ref, vv_ref, vl_ref, mv_ref, ml_ref, ov_ref, ol_ref, *, nhead):
    # Per-batch fused bidirectional attention (BiMultiHeadAttention).
    # q is pre-scaled (scale folded into v_proj weights). Transposed scores are recomputed
    # with a second small matmul instead of materializing s.T in VMEM.
    E = q_ref.shape[2]
    dh = E // nhead
    q = q_ref[0].astype(jnp.bfloat16)        # (Lv, E)
    k = k_ref[0].astype(jnp.bfloat16)        # (Lt, E)
    vv = vv_ref[0].astype(jnp.bfloat16)      # (Lv, E)
    vl = vl_ref[0].astype(jnp.bfloat16)      # (Lt, E)
    mv_add = jnp.where(mv_ref[0] != 0, NEG_INF, 0.0)   # (1, Lv)
    ml_add = jnp.where(ml_ref[0] != 0, NEG_INF, 0.0)   # (1, Lt)
    outs_v, outs_l = [], []
    for h in range(nhead):
        lo = h * dh
        qh, kh = q[:, lo:lo + dh], k[:, lo:lo + dh]
        vvh, vlh = vv[:, lo:lo + dh], vl[:, lo:lo + dh]

        # vision queries attend text keys (softmax over text, text padding masked)
        s_v = lax.dot_general(qh, kh, (((1,), (1,)), ((), ())),
                              preferred_element_type=jnp.float32) + ml_add
        p_v = _softmax_rows(s_v)
        outs_v.append(jnp.dot(p_v.astype(jnp.bfloat16), vlh,
                              preferred_element_type=jnp.float32))

        # text queries attend vision keys (softmax over vision, vision padding masked)
        s_l = lax.dot_general(kh, qh, (((1,), (1,)), ((), ())),
                              preferred_element_type=jnp.float32) + mv_add
        p_l = _softmax_rows(s_l)
        outs_l.append(jnp.dot(p_l.astype(jnp.bfloat16), vvh,
                              preferred_element_type=jnp.float32))

    ov_ref[0] = jnp.concatenate(outs_v, axis=-1)
    ol_ref[0] = jnp.concatenate(outs_l, axis=-1)


def pallas_biattn(q, k, vv, vl, mv, ml):
    bs, Lv, E = q.shape
    Lt = k.shape[1]
    return pl.pallas_call(
        functools.partial(_biattn_kernel, nhead=TEXT_NHEAD),
        out_shape=(jax.ShapeDtypeStruct((bs, Lv, E), jnp.float32),
                   jax.ShapeDtypeStruct((bs, Lt, E), jnp.float32)),
        grid=(bs,),
        in_specs=[
            pl.BlockSpec((1, Lv, E), lambda i: (i, 0, 0)),
            pl.BlockSpec((1, Lt, E), lambda i: (i, 0, 0)),
            pl.BlockSpec((1, Lv, E), lambda i: (i, 0, 0)),
            pl.BlockSpec((1, Lt, E), lambda i: (i, 0, 0)),
            pl.BlockSpec((1, 1, Lv), lambda i: (i, 0, 0)),
            pl.BlockSpec((1, 1, Lt), lambda i: (i, 0, 0)),
        ],
        out_specs=(pl.BlockSpec((1, Lv, E), lambda i: (i, 0, 0)),
                   pl.BlockSpec((1, Lt, E), lambda i: (i, 0, 0))),
        compiler_params=_CP1,
    )(q, k, vv, vl, mv, ml)


# ============================= plain-JAX glue =============================

def get_sine_pos_embed(pos_tensor, num_pos_feats=128, temperature=10000, exchange_xy=True):
    scale = 2.0 * math.pi
    dim_t = jnp.arange(num_pos_feats, dtype=jnp.float32)
    dim_t = temperature ** (2.0 * jnp.floor(dim_t / 2.0) / num_pos_feats)

    def sine_func(x):                       # x: (..., 1)
        sin_x = x * scale / dim_t           # (..., num_pos_feats)
        stacked = jnp.stack((jnp.sin(sin_x[..., 0::2]), jnp.cos(sin_x[..., 1::2])), axis=-1)
        return stacked.reshape(*sin_x.shape[:-1], num_pos_feats)

    parts = [sine_func(pos_tensor[..., i:i + 1]) for i in range(pos_tensor.shape[-1])]
    if exchange_xy and len(parts) >= 2:
        parts[0], parts[1] = parts[1], parts[0]
    return jnp.concatenate(parts, axis=-1)


def get_reference_points(spatial_shapes_list, valid_ratios):
    ref_list = []
    for lvl, (H_, W_) in enumerate(spatial_shapes_list):
        ref_y, ref_x = jnp.meshgrid(
            jnp.linspace(0.5, H_ - 0.5, H_, dtype=jnp.float32),
            jnp.linspace(0.5, W_ - 0.5, W_, dtype=jnp.float32),
            indexing="ij")
        ref_y = ref_y.reshape(-1)[None] / (valid_ratios[:, None, lvl, 1] * H_)
        ref_x = ref_x.reshape(-1)[None] / (valid_ratios[:, None, lvl, 0] * W_)
        ref_list.append(jnp.stack((ref_x, ref_y), axis=-1))
    reference_points = jnp.concatenate(ref_list, axis=1)        # (bs, sum_hw, 2)
    reference_points = reference_points[:, :, None] * valid_ratios[:, None]  # (bs, sum_hw, nl, 2)
    return reference_points


def ms_deform_attn_core(value, spatial_shapes_list, sampling_locations, attention_weights):
    # TODO(synk): deformable bilinear gather is data-dependent; kept in plain JAX rather than a
    # Pallas DMA-gather kernel. Reproduces multi_scale_deformable_attn_pytorch semantics
    # (grid_sample bilinear, padding_mode='zeros', align_corners=False).
    bs, _, n_heads, head_dim = value.shape
    _, Lq, _, n_levels, n_points, _ = sampling_locations.shape
    splits = [h * w for h, w in spatial_shapes_list]
    offsets = np.concatenate([[0], np.cumsum(splits)])
    sampling_grids = 2.0 * sampling_locations - 1.0
    per_level = []
    for lvl, (H_, W_) in enumerate(spatial_shapes_list):
        val_l = value[:, offsets[lvl]:offsets[lvl + 1]]                  # (bs, H*W, nh, dh)
        val_l = jnp.transpose(val_l, (0, 2, 1, 3))                       # (bs, nh, H*W, dh)
        grid_l = jnp.transpose(sampling_grids[:, :, :, lvl], (0, 2, 1, 3, 4))  # (bs, nh, Lq, P, 2)
        x = (grid_l[..., 0] + 1.0) * W_ / 2.0 - 0.5
        y = (grid_l[..., 1] + 1.0) * H_ / 2.0 - 0.5
        x0 = jnp.floor(x); y0 = jnp.floor(y)
        x1 = x0 + 1.0; y1 = y0 + 1.0
        wx1 = x - x0; wx0 = 1.0 - wx1
        wy1 = y - y0; wy0 = 1.0 - wy1

        def gather(xi, yi):
            inb = ((xi >= 0) & (xi <= W_ - 1) & (yi >= 0) & (yi <= H_ - 1)).astype(jnp.float32)
            xi_c = jnp.clip(xi, 0, W_ - 1).astype(jnp.int32)
            yi_c = jnp.clip(yi, 0, H_ - 1).astype(jnp.int32)
            idx = (yi_c * W_ + xi_c).reshape(bs, n_heads, Lq * n_points)
            idx = jnp.broadcast_to(idx[..., None], (bs, n_heads, Lq * n_points, head_dim))
            g = jnp.take_along_axis(val_l, idx, axis=2)
            g = g.reshape(bs, n_heads, Lq, n_points, head_dim)
            return g * inb[..., None]

        samp = (gather(x0, y0) * (wx0 * wy0)[..., None]
                + gather(x1, y0) * (wx1 * wy0)[..., None]
                + gather(x0, y1) * (wx0 * wy1)[..., None]
                + gather(x1, y1) * (wx1 * wy1)[..., None])               # (bs, nh, Lq, P, dh)
        per_level.append(samp)
    samp_all = jnp.stack(per_level, axis=3)                              # (bs, nh, Lq, nl, P, dh)
    aw = jnp.transpose(attention_weights, (0, 2, 1, 3, 4))               # (bs, nh, Lq, nl, P)
    out = jnp.sum(samp_all * aw[..., None], axis=(3, 4))                 # (bs, nh, Lq, dh)
    return jnp.transpose(out, (0, 2, 1, 3)).reshape(bs, Lq, n_heads * head_dim)


# ============================= sub-modules =============================

def bi_attention_block(p, v, l, attention_mask_v, attention_mask_l):
    """GroundingDINO BiAttentionBlock (fusion layer). Residual is on the normalized inputs."""
    bs, Lv, d = v.shape
    Lt = l.shape[1]
    E = TEXT_DFF

    # fused LN -> [q | values] projections (scale already folded into the q half)
    qvv, v_n = pallas_ln_linear(v.reshape(-1, d), p["ln_v"]["g"], p["ln_v"]["b"],
                                p["wv_cat"], p["bv_cat"])
    kvl, l_n = pallas_ln_linear(l.reshape(-1, d), p["ln_l"]["g"], p["ln_l"]["b"],
                                p["wl_cat"], p["bl_cat"])
    q = qvv[:, :E].reshape(bs, Lv, E)
    vv = qvv[:, E:].reshape(bs, Lv, E)
    k = kvl[:, :E].reshape(bs, Lt, E)
    vl = kvl[:, E:].reshape(bs, Lt, E)

    # small integer padding masks; additive mask is built inside the kernel
    mv = attention_mask_v.astype(jnp.int32).reshape(bs, 1, Lv)
    ml = attention_mask_l.astype(jnp.int32).reshape(bs, 1, Lt)

    ov, ol = pallas_biattn(q, k, vv, vl, mv, ml)     # (bs, Lv, E), (bs, Lt, E)

    # out-projection + layer-scale residual fused (dropout / drop_path identity in eval)
    v_out = pallas_linear_res_gamma(ov.reshape(-1, E), p["w_out_v"], p["b_out_v"],
                                    v_n, p["gamma_v"]).reshape(bs, Lv, d)
    l_out = pallas_linear_res_gamma(ol.reshape(-1, E), p["w_out_l"], p["b_out_l"],
                                    l_n, p["gamma_l"]).reshape(bs, Lt, d)
    return v_out, l_out


def text_enhance_layer(p, memory_text, src_mask, pos_text):
    """Vanilla TransformerEncoderLayer used as the text enhancer.
    src_key_padding_mask is NOT used (matches the reference code)."""
    bs, Lt, d = memory_text.shape
    H = TEXT_NHEAD
    x2 = memory_text.reshape(-1, d)

    # fused (x + pos) -> [q | k] projection; attention scale folded into the q half
    qk = pallas_add_linear(x2, pos_text.reshape(-1, d), p["wqk"], p["bqk"])
    q = qk[:, :d].reshape(bs, Lt, d)
    k = qk[:, d:].reshape(bs, Lt, d)
    v = pallas_linear(x2, p["wv"], p["bv"]).reshape(bs, Lt, d)

    # reproduce `src_mask.repeat(nhead, 1, 1)` head-major tiling quirk vs the batch-major
    # q/k/v head flattening (same behavior as the PyTorch module): (b, h) -> (b*H + h) % bs
    idx = (jnp.arange(bs)[:, None] * H + jnp.arange(H)[None, :]) % bs
    mask_bh = src_mask[idx].astype(jnp.int32)        # (bs, H, Lt, Lt)

    attn = pallas_text_attn(q, k, v, mask_bh)        # (bs, Lt, d), lane-dense output
    src2 = pallas_linear(attn.reshape(-1, d), p["wo"], p["bo"])

    # residual + norm1 + linear1(relu) fused (also returns the normalized residual base)
    h1, src_n = pallas_add_ln_linear(x2, src2, p["norm1"]["g"], p["norm1"]["b"],
                                     p["w1"], p["b1"], act="relu")
    # linear2 + residual + norm2 fused
    out = pallas_linear_add_ln(h1, p["w2"], p["b2"], src_n,
                               p["norm2"]["g"], p["norm2"]["b"])
    return out.reshape(bs, Lt, d)


def deformable_encoder_layer(p, src, pos, reference_points, spatial_shapes_list,
                             key_padding_mask):
    bs, L, d = src.shape
    H, NL, P = NHEAD, N_LEVELS, N_POINTS
    Dh = d // H
    x2 = src.reshape(-1, d)

    val = pallas_linear(x2, p["w_val"], p["b_val"]).reshape(bs, L, d)
    val = jnp.where(key_padding_mask[..., None], 0.0, val).reshape(bs, L, H, Dh)

    # fused (src + pos) -> [sampling_offsets | attention_weights]
    offaw = pallas_add_linear(x2, pos.reshape(-1, d), p["w_offaw"], p["b_offaw"])
    n_off = H * NL * P * 2
    off = offaw[:, :n_off].reshape(bs, L, H, NL, P, 2)
    aw = jax.nn.softmax(offaw[:, n_off:].reshape(bs, L, H, NL * P), axis=-1)
    aw = aw.reshape(bs, L, H, NL, P)

    offset_normalizer = jnp.asarray([[w, h] for h, w in spatial_shapes_list], jnp.float32)
    sampling_locations = (reference_points[:, :, None, :, None, :]
                          + off / offset_normalizer[None, None, None, :, None, :])
    deform = ms_deform_attn_core(val, spatial_shapes_list, sampling_locations, aw)

    src2 = pallas_linear(deform.reshape(-1, d), p["w_out"], p["b_out"])
    h1, src_n = pallas_add_ln_linear(x2, src2, p["norm1"]["g"], p["norm1"]["b"],
                                     p["w1"], p["b1"], act="relu")
    out = pallas_linear_add_ln(h1, p["w2"], p["b2"], src_n,
                               p["norm2"]["g"], p["norm2"]["b"])
    return out.reshape(bs, L, d)


# ============================= CADM forward =============================

def cadm_forward(params, src, pos, spatial_shapes_list, level_start_index, valid_ratios,
                 key_padding_mask, memory_text, text_attention_mask,
                 pos_text=None, text_self_attention_masks=None, position_ids=None):
    """TransformerEncoder.forward with num_layers == 1 (fusion -> text enhancer -> vision)."""
    del level_start_index  # levels are split statically from spatial_shapes_list
    bs, n_text, _ = memory_text.shape

    reference_points = get_reference_points(spatial_shapes_list, valid_ratios)

    if pos_text is None and position_ids is None:
        pos_t = jnp.tile(jnp.arange(n_text, dtype=jnp.float32)[None, :, None], (bs, 1, 1))
        pos_text = get_sine_pos_embed(pos_t, num_pos_feats=256, exchange_xy=False)
    if position_ids is not None:
        pos_text = get_sine_pos_embed(position_ids[..., None].astype(jnp.float32),
                                      num_pos_feats=256, exchange_xy=False)

    output = src
    # 1) feature fusion (BiAttentionBlock)
    output, memory_text = bi_attention_block(params["fusion"], output, memory_text,
                                             key_padding_mask, text_attention_mask)
    # 2) text enhancer (src_mask = ~text_self_attention_masks)
    memory_text = text_enhance_layer(params["text"], memory_text,
                                     jnp.logical_not(text_self_attention_masks), pos_text)
    # 3) deformable vision encoder layer
    output = deformable_encoder_layer(params["vision"], output, pos, reference_points,
                                      spatial_shapes_list, key_padding_mask)
    return output, memory_text


# ============================= parameters =============================

def make_params(key):
    keys = iter(jax.random.split(key, 80))

    def lin(din, dout):
        w = 0.02 * jax.random.normal(next(keys), (din, dout), jnp.float32)
        b = 0.02 * jax.random.normal(next(keys), (dout,), jnp.float32)
        return {"w": w, "b": b}

    def ln(d):
        return {"g": jnp.ones((d,), jnp.float32), "b": jnp.zeros((d,), jnp.float32)}

    d, e = D_MODEL, TEXT_DFF
    fusion = {
        "ln_v": ln(d), "ln_l": ln(d),
        "v_proj": lin(d, e), "l_proj": lin(d, e),
        "values_v_proj": lin(d, e), "values_l_proj": lin(d, e),
        "out_v_proj": lin(e, d), "out_l_proj": lin(e, d),
        "gamma_v": 1e-4 * jnp.ones((d,), jnp.float32),
        "gamma_l": 1e-4 * jnp.ones((d,), jnp.float32),
    }
    text = {
        "q": lin(d, d), "k": lin(d, d), "v": lin(d, d), "out": lin(d, d),
        "norm1": ln(d), "norm2": ln(d),
        "linear1": lin(d, TEXT_DFF), "linear2": lin(TEXT_DFF, d),
    }
    vision = {
        "sampling_offsets": lin(d, NHEAD * N_LEVELS * N_POINTS * 2),
        "attention_weights": lin(d, NHEAD * N_LEVELS * N_POINTS),
        "value_proj": lin(d, d), "output_proj": lin(d, d),
        "norm1": ln(d), "norm2": ln(d),
        "linear1": lin(d, DFF), "linear2": lin(DFF, d),
    }
    return {"fusion": fusion, "text": text, "vision": vision}


def prepare_params(params):
    """One-time prep: fuse shared-input projections along N, fold attention scales into the
    q-projection weights, and cast matmul weights to bf16 (f32 accumulation in-kernel)."""
    d, e = D_MODEL, TEXT_DFF

    def bf(w):
        return w.astype(jnp.bfloat16)

    f = params["fusion"]
    scale_f = (e // TEXT_NHEAD) ** (-0.5)
    fusion = {
        "ln_v": f["ln_v"], "ln_l": f["ln_l"],
        "wv_cat": bf(jnp.concatenate([f["v_proj"]["w"] * scale_f, f["values_v_proj"]["w"]], 1)),
        "bv_cat": jnp.concatenate([f["v_proj"]["b"] * scale_f, f["values_v_proj"]["b"]]),
        "wl_cat": bf(jnp.concatenate([f["l_proj"]["w"], f["values_l_proj"]["w"]], 1)),
        "bl_cat": jnp.concatenate([f["l_proj"]["b"], f["values_l_proj"]["b"]]),
        "w_out_v": bf(f["out_v_proj"]["w"]), "b_out_v": f["out_v_proj"]["b"],
        "w_out_l": bf(f["out_l_proj"]["w"]), "b_out_l": f["out_l_proj"]["b"],
        "gamma_v": f["gamma_v"], "gamma_l": f["gamma_l"],
    }

    t = params["text"]
    scale_t = (d // TEXT_NHEAD) ** (-0.5)
    text = {
        "wqk": bf(jnp.concatenate([t["q"]["w"] * scale_t, t["k"]["w"]], 1)),
        "bqk": jnp.concatenate([t["q"]["b"] * scale_t, t["k"]["b"]]),
        "wv": bf(t["v"]["w"]), "bv": t["v"]["b"],
        "wo": bf(t["out"]["w"]), "bo": t["out"]["b"],
        "norm1": t["norm1"], "norm2": t["norm2"],
        "w1": bf(t["linear1"]["w"]), "b1": t["linear1"]["b"],
        "w2": bf(t["linear2"]["w"]), "b2": t["linear2"]["b"],
    }

    v = params["vision"]
    vision = {
        "w_offaw": bf(jnp.concatenate([v["sampling_offsets"]["w"],
                                       v["attention_weights"]["w"]], 1)),
        "b_offaw": jnp.concatenate([v["sampling_offsets"]["b"], v["attention_weights"]["b"]]),
        "w_val": bf(v["value_proj"]["w"]), "b_val": v["value_proj"]["b"],
        "w_out": bf(v["output_proj"]["w"]), "b_out": v["output_proj"]["b"],
        "norm1": v["norm1"], "norm2": v["norm2"],
        "w1": bf(v["linear1"]["w"]), "b1": v["linear1"]["b"],
        "w2": bf(v["linear2"]["w"]), "b2": v["linear2"]["b"],
    }
    return {"fusion": fusion, "text": text, "vision": vision}


# ============================= main =============================

if __name__ == "__main__":
    key = jax.random.PRNGKey(0)
    kp, kd = jax.random.split(key)
    params = prepare_params(make_params(kp))

    bs = 2
    spatial_shapes_list = [(8, 8), (4, 4)]
    sum_hw = sum(h * w for h, w in spatial_shapes_list)        # 80
    n_text = 8

    ks = jax.random.split(kd, 8)
    src = jax.random.normal(ks[0], (bs, sum_hw, D_MODEL), jnp.float32)
    pos = jax.random.normal(ks[1], (bs, sum_hw, D_MODEL), jnp.float32)
    memory_text = jax.random.normal(ks[2], (bs, n_text, D_MODEL), jnp.float32)
    valid_ratios = jax.random.uniform(ks[3], (bs, N_LEVELS, 2), jnp.float32, 0.8, 1.0)

    key_padding_mask = jnp.zeros((bs, sum_hw), dtype=jnp.bool_).at[1, -4:].set(True)
    text_attention_mask = jnp.zeros((bs, n_text), dtype=jnp.bool_).at[1, -2:].set(True)

    # block-diagonal "same phrase" self-attention mask (True = allowed to attend)
    g = np.zeros((n_text, n_text), dtype=bool)
    g[:5, :5] = True
    g[5:, 5:] = True
    text_self_attention_masks = jnp.broadcast_to(jnp.asarray(g), (bs, n_text, n_text))

    spatial_shapes = jnp.asarray(spatial_shapes_list, jnp.int32)
    level_start_index = jnp.asarray(
        [0] + list(np.cumsum([h * w for h, w in spatial_shapes_list])[:-1]), jnp.int32)

    memory, memory_text_out = cadm_forward(
        params, src, pos, spatial_shapes_list, level_start_index, valid_ratios,
        key_padding_mask, memory_text, text_attention_mask,
        text_self_attention_masks=text_self_attention_masks, position_ids=None)

    jax.block_until_ready((memory, memory_text_out))
    assert memory.shape == (bs, sum_hw, D_MODEL)
    assert memory_text_out.shape == (bs, n_text, D_MODEL)
    assert np.isfinite(np.asarray(memory)).all()
    assert np.isfinite(np.asarray(memory_text_out)).all()
    print("KERNEL_OK")
</pallas_src>

<mosaic_0001>
module attributes {stable_mosaic.version = 11 : i64} {
  func.func @_ln_linear_kernel(%arg0: i32, %arg1: memref<80x256xf32, #tpu.memory_space<vmem>>, %arg2: memref<1x256xf32, #tpu.memory_space<vmem>>, %arg3: memref<1x256xf32, #tpu.memory_space<vmem>>, %arg4: memref<256x512xbf16, #tpu.memory_space<vmem>>, %arg5: memref<1x512xf32, #tpu.memory_space<vmem>>, %arg6: memref<80x512xf32, #tpu.memory_space<vmem>>, %arg7: memref<80x256xf32, #tpu.memory_space<vmem>>) attributes {dimension_semantics = [#tpu.dimension_semantics<parallel>], iteration_bounds = array<i64: 2>, scalar_prefetch = 0 : i64, scratch_operands = 0 : i64, tpu.core_type = #tpu.core_type<tc>, window_params = [{transform_indices = @transform_0, window_bounds = array<i64: 80, 256>}, {pipeline_mode = #tpu.pipeline_mode<synchronous>, transform_indices = @transform_1, window_bounds = array<i64: 1, 256>}, {pipeline_mode = #tpu.pipeline_mode<synchronous>, transform_indices = @transform_2, window_bounds = array<i64: 1, 256>}, {pipeline_mode = #tpu.pipeline_mode<synchronous>, transform_indices = @transform_3, window_bounds = array<i64: 256, 512>}, {pipeline_mode = #tpu.pipeline_mode<synchronous>, transform_indices = @transform_4, window_bounds = array<i64: 1, 512>}, {transform_indices = @transform_5, window_bounds = array<i64: 80, 512>}, {transform_indices = @transform_6, window_bounds = array<i64: 80, 256>}]} {
    %c0 = arith.constant 0 : index
    %c0_0 = arith.constant 0 : index
    %0 = vector.load %arg1[%c0, %c0_0] : memref<80x256xf32, #tpu.memory_space<vmem>>, vector<80x256xf32>
    %cst = arith.constant dense<0.000000e+00> : vector<80xf32>
    %1 = vector.multi_reduction <add>, %0, %cst [1] : vector<80x256xf32> to vector<80xf32>
    %2 = vector.shape_cast %1 : vector<80xf32> to vector<80x1xf32>
    %cst_1 = arith.constant 2.560000e+02 : f32
    %3 = vector.broadcast %cst_1 : f32 to vector<80x1xf32>
    %4 = arith.divf %2, %3 : vector<80x1xf32>
    %5 = vector.broadcast %4 : vector<80x1xf32> to vector<80x256xf32>
    %6 = arith.subf %0, %5 : vector<80x256xf32>
    %7 = arith.mulf %6, %6 : vector<80x256xf32>
    %cst_2 = arith.constant dense<0.000000e+00> : vector<80xf32>
    %8 = vector.multi_reduction <add>, %7, %cst_2 [1] : vector<80x256xf32> to vector<80xf32>
    %9 = vector.shape_cast %8 : vector<80xf32> to vector<80x1xf32>
    %cst_3 = arith.constant 2.560000e+02 : f32
    %10 = vector.broadcast %cst_3 : f32 to vector<80x1xf32>
    %11 = arith.divf %9, %10 : vector<80x1xf32>
    %cst_4 = arith.constant 9.99999974E-6 : f32
    %12 = vector.broadcast %cst_4 : f32 to vector<80x1xf32>
    %13 = arith.addf %11, %12 : vector<80x1xf32>
    %14 = math.rsqrt %13 : vector<80x1xf32>
    %15 = vector.broadcast %14 : vector<80x1xf32> to vector<80x256xf32>
    %16 = arith.mulf %6, %15 : vector<80x256xf32>
    %c0_5 = arith.constant 0 : index
    %c0_6 = arith.constant 0 : index
    %17 = vector.load %arg2[%c0_5, %c0_6] : memref<1x256xf32, #tpu.memory_space<vmem>>, vector<1x256xf32>
    %18 = vector.broadcast %17 : vector<1x256xf32> to vector<80x256xf32>
    %19 = arith.mulf %16, %18 : vector<80x256xf32>
    %c0_7 = arith.constant 0 : index
    %c0_8 = arith.constant 0 : index
    %20 = vector.load %arg3[%c0_7, %c0_8] : memref<1x256xf32, #tpu.memory_space<vmem>>, vector<1x256xf32>
    %21 = vector.broadcast %20 : vector<1x256xf32> to vector<80x256xf32>
    %22 = arith.addf %19, %21 : vector<80x256xf32>
    %c0_9 = arith.constant 0 : index
    %c0_10 = arith.constant 0 : index
    %23 = vector.load %arg7[%c0_9, %c0_10] : memref<80x256xf32, #tpu.memory_space<vmem>>, vector<80x256xf32>
    tpu.vector_store %arg7[%c0_9, %c0_10], %22 {strides = array<i32>} : memref<80x256xf32, #tpu.memory_space<vmem>>, vector<80x256xf32>,
    %24 = arith.truncf %22 : vector<80x256xf32> to vector<80x256xbf16>
    %c0_11 = arith.constant 0 : index
    %c0_12 = arith.constant 0 : index
    %25 = vector.load %arg4[%c0_11, %c0_12] : memref<256x512xbf16, #tpu.memory_space<vmem>>, vector<256x512xbf16>
    %cst_13 = arith.constant dense<0.000000e+00> : vector<80x512xf32>
    %26 = tpu.matmul %24, %25, %cst_13 {dimension_numbers = #tpu.dot_dimension_numbers<[1], [0], [0], [1], [0, 0, 1, 1], [], []>} : vector<80x256xbf16>, vector<256x512xbf16>, vector<80x512xf32> -> vector<80x512xf32>
    %c0_14 = arith.constant 0 : index
    %c0_15 = arith.constant 0 : index
    %27 = vector.load %arg5[%c0_14, %c0_15] : memref<1x512xf32, #tpu.memory_space<vmem>>, vector<1x512xf32>
    %28 = vector.broadcast %27 : vector<1x512xf32> to vector<80x512xf32>
    %29 = arith.addf %26, %28 : vector<80x512xf32>
    %c0_16 = arith.constant 0 : index
    %c0_17 = arith.constant 0 : index
    %30 = vector.load %arg6[%c0_16, %c0_17] : memref<80x512xf32, #tpu.memory_space<vmem>>, vector<80x512xf32>
    tpu.vector_store %arg6[%c0_16, %c0_17], %29 {strides = array<i32>} : memref<80x512xf32, #tpu.memory_space<vmem>>, vector<80x512xf32>,
    return
  }
  func.func @transform_0(%arg0: i32) -> (i32, i32) {
    %c0_i32 = arith.constant 0 : i32
    %c0_i32_0 = arith.constant 0 : i32
    return %arg0, %c0_i32 : i32, i32
  }
  func.func @transform_1(%arg0: i32) -> (i32, i32) {
    %c0_i32 = arith.constant 0 : i32
    %c0_i32_0 = arith.constant 0 : i32
    %c0_i32_1 = arith.constant 0 : i32
    return %c0_i32, %c0_i32_0 : i32, i32
  }
  func.func @transform_2(%arg0: i32) -> (i32, i32) {
    %c0_i32 = arith.constant 0 : i32
    %c0_i32_0 = arith.constant 0 : i32
    %c0_i32_1 = arith.constant 0 : i32
    return %c0_i32, %c0_i32_0 : i32, i32
  }
  func.func @transform_3(%arg0: i32) -> (i32, i32) {
    %c0_i32 = arith.constant 0 : i32
    %c0_i32_0 = arith.constant 0 : i32
    %c0_i32_1 = arith.constant 0 : i32
    return %c0_i32, %c0_i32_0 : i32, i32
  }
  func.func @transform_4(%arg0: i32) -> (i32, i32) {
    %c0_i32 = arith.constant 0 : i32
    %c0_i32_0 = arith.constant 0 : i32
    %c0_i32_1 = arith.constant 0 : i32
    return %c0_i32, %c0_i32_0 : i32, i32
  }
  func.func @transform_5(%arg0: i32) -> (i32, i32) {
    %c0_i32 = arith.constant 0 : i32
    %c0_i32_0 = arith.constant 0 : i32
    return %arg0, %c0_i32 : i32, i32
  }
  func.func @transform_6(%arg0: i32) -> (i32, i32) {
    %c0_i32 = arith.constant 0 : i32
    %c0_i32_0 = arith.constant 0 : i32
    return %arg0, %c0_i32 : i32, i32
  }
}

</mosaic_0001>

<bundles_post_ra>
// kernel: tpu_custom_call.1
= control target key start
LH: loop header
LB: loop body
LE: loop exit
PB: predicated region body
PF: predicated region fallthrough
CT: control target
= control target key end

     0   :  { %s2542_s0 = inlined_call_operand.hbm [shape: f32[160,256], index: 0, kind: input, shape index: {}]   ;;  %s2543_s1 = inlined_call_operand.vmem [shape: f32[1,256], index: 1, kind: input, shape index: {}]   ;;  %s2544_s2 = inlined_call_operand.hbm [shape: f32[1,256], index: 2, kind: input, shape index: {}]   ;;  %s2545_s3 = inlined_call_operand.hbm [shape: bf16[256,512], index: 3, kind: input, shape index: {}]   ;;  %s2546_s4 = inlined_call_operand.vmem [shape: f32[1,512], index: 4, kind: input, shape index: {}]   ;;  %s2547_s5 = inlined_call_operand.hbm [shape: f32[160,512], index: 5, kind: output, shape index: {0}]   ;;  %s2548_s6 = inlined_call_operand.hbm [shape: f32[160,256], index: 6, kind: output, shape index: {1}]  }
   0x1   :  { %2555 = sst [smem:[#allocation17_spill]] %s2544_s2 }
   0x2   :  { %12 = vsyncpa [#allocation3], 0 }
   0x3   :  { %14 = vsyncpa [#allocation3 + $0x1], 0 }
   0x4   :  { %15 = vsyncpa [#allocation6], 0 }
   0x5   :  { %16 = vsyncpa [#allocation4], 0 }
   0x6   :  { %18 = vsyncpa [#allocation4 + $0x1], 0 }
   0x7   :  { %19 = vsyncpa [#allocation10], 0 }
   0x8   :  { %21 = vsyncpa [#allocation10 + $0x1], 0  ;;  %s1882_s21 = smov 0   ;;  %s1884_s22 = smov 0  }
   0x9   :  { %s1886_s23 = smov 0   ;;  %s1888_s24 = smov 0  }
   0xa LB: > { %2556 = sst [smem:[#allocation15_spill]] %s1830_s23  ;;  %s1903_s25 = sadd.s32 4294967295, %s1834_s24   ;;  %s1834_s24 = sphi %s1888_s24, %s2579_s24   ;;  %s1830_s23 = sphi %s1886_s23, %s2576_s23   ;;  %s1826_s22 = sphi %s1884_s22, %s2578_s22   ;;  %s1822_s21 = sphi %s1882_s21, %s2577_s21  }
   0xb   : > { %s1360_s26 = sadd.s32 4294967294, %s1834_s24   ;;  %s1907_s27 = sadd.s32 1, %s1834_s24  }
   0xc   : > { %s34_s28 = sadd.s32 1, %s1830_s23  ;;  %s31_s29 = ssub.s32 %s1834_s24, %s1907_s27 }
   0xd   : > { %p41_p0 = scmp.ne.s32.totalorder %s1830_s23, %s1826_s22  ;;  %p32_p1 = scmp.eq.s32.totalorder %s31_s29, 0 }
   0xe   : > { %p42_p2 = scmp.eq.s32.totalorder %s1834_s24, 0  ;;  %p47_p3 = scmp.ne.s32.totalorder %s1826_s22, %s1822_s21 }
   0xf   : > { %p2549_p4 = scmp.eq.s32.totalorder %s1903_s25, 0  ;;  %p155_p7 = scmp.eq.s32.totalorder %s1903_s25, 1 }
  0x10   : > { %s1919_s30 = scalar_select %p32_p1, %s1830_s23, %s34_s28  }
  0x11   : > { %p1921_p5 = por %p42_p2, %p41_p0  ;;  %p1927_p6 = por %p2549_p4, %p47_p3 }
  0x12   : > { %2557 = sst [smem:[#allocation16_spill]] %s1919_s30  ;;  %p161_p8 = scmp.eq.s32.totalorder %s1360_s26, 1 }
  0x13   : > { %s2559_s8 = scalar_select %p1927_p6, 1, 0 }
  0x14   : > { %p1361_p9 = scmp.ge.s32.totalorder %s1834_s24, 1  ;;  %p194_p10 = scmp.lt.s32.totalorder %s1834_s24, 3 }
  0x15   : > { %p1934_p11 = por %p155_p7, %p41_p0  ;;  %p1938_p12 = por %p161_p8, %p47_p3 }
  0x16   : > { %p1942_p13 = pnand %p1361_p9, %p194_p10  ;;  %s1836_s12 = smov [#allocation5]  }
  0x17   : > { %s2560_s9 = scalar_select %p1934_p11, 1, 0 }
  0x18   : > { %s2561_s10 = scalar_select %p1938_p12, 1, 0 }
  0x19   : > { %s2562_s11 = scalar_select %p1942_p13, 1, 0 }
  0x1a   : > { %p1466_p2 = pneg %p1942_p13  ;;  %s210_s13 = sshll.u32 %s1836_s12, 4  ;;  %s211_s13 = int_to_ptr.vmem [resolvable:$true] %s210_s13 }
  0x1b   : > { %p1486_p4 = scmp.lt.s32.totalorder %s1834_s24, 2  ;;  %p2563_p0 = scmp.eq.s32.totalorder %s1903_s25, 0 }
  0x1c   : > { %s1837_s16 = smov [#allocation7]   ;;  %s2566_s2 = sld [smem:[#allocation17_spill]] }
  0x1d   : > { %p1952_p7 = pnand %p1466_p2, %p2563_p0  ;;  %p1958_p3 = pnand %p1486_p4, %p1921_p5 }
  0x1e   : > { %s220_s17 = sshll.u32 %s1837_s16, 4  ;;  %s1962_s17 = int_to_ptr.vmem [resolvable:$true] %s220_s17 }
  0x1f   : > { %s2565_s15 = scalar_select %p1958_p3, 1, 0 }
  0x20   : > { %p1648_p9 = pneg %p1952_p7 }
  0x22   : > { %s1646_s20 = scalar_lea.hbm %s2566_s2, 32 }
  0x23   : > { %p1647_p8 = scmp.ne.s32.totalorder %s2566_s2, %s1646_s20  ;;  %p1653_p10 = scmp.lt.u32.totalorder %s1646_s20, %s2566_s2 }
  0x25   : > { %p1649_p4 = pnand %p1648_p9, %p1647_p8 }
  0x27   : > { %p1650_p5 = pneg %p1649_p4 }
  0x29   : > { %p1655_p2 = pnand %p1653_p10, %p1650_p5 }
  0x2b   : > { %1658 = shalt.err (!%p1655_p2)
}
  0x2c   : > { %s1659_s12 = scalar_lea.vmem %s211_s13, 32  ;;  %p1667_p11 = scmp.lt.s32.totalorder %s211_s13, %s211_s13 }
  0x2d   : > { %p1660_p0 = scmp.ne.s32.totalorder %s211_s13, %s1659_s12  ;;  %p1668_p6 = scmp.lt.s32.totalorder %s1659_s12, %s1659_s12 }
  0x2f   : > { %p1662_p1 = pnand %p1660_p0, %p1648_p9  ;;  %p1669_p13 = por %p1668_p6, %p1667_p11 }
  0x31   : > { %p1663_p12 = pneg %p1662_p1 }
  0x33   : > { %p1670_p3 = pnand %p1669_p13, %p1663_p12 }
  0x35   : > { %1673 = shalt.err (!%p1670_p3)
}
  0x36   : > { %1469 = dma.hbm_to_vmem [thread:$0]  (!%p1952_p7), %s2566_s2, 32, %s211_s13, [#allocation6]  }
  0x37   : > { %s237_s19 = sand.u32 1, %s1830_s23   ;;  %s1674_s28 = scalar_lea.hbm %s2545_s3, 8192 }
  0x38   : > { %p1675_p1 = scmp.ne.s32.totalorder %s2545_s3, %s1674_s28  ;;  %p1681_p12 = scmp.lt.u32.totalorder %s1674_s28, %s2545_s3 }
  0x3a   : > { %p1677_p6 = pnand %p1675_p1, %p1648_p9 }
  0x3c   : > { %p1678_p11 = pneg %p1677_p6 }
  0x3e   : > { %p1683_p13 = pnand %p1681_p12, %p1678_p11 }
  0x40   : > { %1686 = shalt.err (!%p1683_p13)
}
  0x41   : > { %s1687_s13 = scalar_lea.vmem %s1962_s17, 8192  ;;  %p1695_p5 = scmp.lt.s32.totalorder %s1962_s17, %s1962_s17 }
  0x42   : > { %p1688_p3 = scmp.ne.s32.totalorder %s1962_s17, %s1687_s13  ;;  %p1696_p10 = scmp.lt.s32.totalorder %s1687_s13, %s1687_s13 }
  0x44   : > { %p1690_p8 = pnand %p1688_p3, %p1648_p9  ;;  %p1697_p2 = por %p1696_p10, %p1695_p5 }
  0x46   : > { %p1691_p4 = pneg %p1690_p8 }
  0x48   : > { %p1698_p0 = pnand %p1697_p2, %p1691_p4 }
  0x4a   : > { %1701 = shalt.err (!%p1698_p0)
}
  0x4b   : > { %s1838_s30 = smov 256   ;;  %s1839_s16 = smov 16  }
  0x4c   : > { %1472 = dma.hbm_to_vmem [thread:$0]  (!%p1952_p7), %s2545_s3, 8192, %s1962_s17, [#allocation6], %s1838_s30, %s1838_s30, %s1839_s16  }
  0x4d   : > { %s1449_s26 = smul.u32 160, %s237_s19  ;;  %s2023_s2 = scalar_lea.sflag [#allocation3], %s237_s19 }
  0x4e   : > { %s1446_s28 = smul.u32 2560, %s1834_s24  ;;  %p2567_p7 = scmp.ne.s32.totalorder %s2565_s15, 0 }
  0x4f   : > { %s241_s13 = scalar_lea.vmem [#allocation2], %s1449_s26  ;;  %s1707_s20 = scalar_lea.hbm %s2542_s0, 5120 }
  0x50   : > { %s2019_s12 = scalar_lea.hbm %s2542_s0, %s1446_s28  ;;  %s249_s14 = sshll.u32 %s241_s13, 4  ;;  %s2021_s14 = int_to_ptr.vmem [resolvable:$true] %s249_s14 }
  0x51   : > { %s1702_s23 = scalar_lea.hbm %s2019_s12, 2560  ;;  %p1704_p1 = pneg %p2567_p7 }
  0x52   : > { %p1703_p9 = scmp.ne.s32.totalorder %s2019_s12, %s1702_s23  ;;  %p1708_p12 = scmp.lt.u32.totalorder %s2019_s12, %s2542_s0 }
  0x53   : > { %p1709_p13 = scmp.lt.u32.totalorder %s1707_s20, %s1702_s23  ;;  %p1711_p8 = scmp.lt.u32.totalorder %s1702_s23, %s2019_s12 }
  0x54   : > { %p1705_p6 = pnand %p1704_p1, %p1703_p9 }
  0x55   : > { %p1710_p3 = por %p1709_p13, %p1708_p12 }
  0x56   : > { %p1706_p11 = pneg %p1705_p6 }
  0x57   : > { %p1712_p4 = por %p1711_p8, %p1710_p3 }
  0x59   : > { %p1713_p5 = pnand %p1712_p4, %p1706_p11 }
  0x5b   : > { %1716 = shalt.err (!%p1713_p5)
}
  0x5c   : > { %s1717_s19 = scalar_lea.vmem %s2021_s14, 2560  ;;  %s1840_s26 = smov [#allocation2]  }
  0x5d   : > { %p1718_p10 = scmp.ne.s32.totalorder %s2021_s14, %s1717_s19  ;;  %s1722_s7 = sshll.u32 %s1840_s26, 4  ;;  %s1723_s7 = int_to_ptr.vmem [resolvable:$false] %s1722_s7 }
  0x5e   : > { %s1724_s13 = scalar_lea.vmem %s1723_s7, 5120  ;;  %p1725_p9 = scmp.lt.s32.totalorder %s2021_s14, %s1723_s7 }
  0x5f   : > { %p1720_p2 = pnand %p1718_p10, %p1704_p1  ;;  %p1726_p6 = scmp.lt.s32.totalorder %s1724_s13, %s1717_s19 }
  0x61   : > { %p1721_p0 = pneg %p1720_p2  ;;  %p1727_p12 = por %p1726_p6, %p1725_p9 }
  0x63   : > { %p1728_p13 = pnand %p1727_p12, %p1721_p0 }
  0x65   : > { %1731 = shalt.err (!%p1728_p13)
}
  0x66   : > { %1476 = dma.hbm_to_vmem [thread:$0]  (!%p2567_p7), %s2019_s12, 2560, %s2021_s14, %s2023_s2, %s1838_s30, %s1838_s30, %s1839_s16  }
  0x67   : > { %p2568_p1 = scmp.ne.s32.totalorder %s2562_s11, 0 }
  0x68   : > { %s2057_s23 = sand.u32 (!%p2568_p1), 1, %s1826_s22   ;;  %p2569_p11 = scmp.ne.s32.totalorder (!%p2568_p1), %s2559_s8, 0 }
  0x69   : > { %261 = sbr.rel (%p2568_p1) target bundleno = 703 (0x2bf), region = 40  ;;  %s264_s18 = scalar_lea.sflag (!%p2568_p1), [#allocation3], %s2057_s23 }
  0x6a   : > { %s1450_s17 = smul.u32 (!%p2568_p1), 160, %s2057_s23 }
  0x6c   : > { %s2063_s15 = scalar_lea.vmem (!%p2568_p1), [#allocation2], %s1450_s17 }
  0x70   : > { %1805 = dma.done.wait (%p2569_p11), %s264_s18, 2560  }
  0x71   : > { %1807 = vsyncadd (%p2569_p11), %s264_s18, 4294964736  ;;  %p2570_p7 = scmp.eq.s32.totalorder %s1903_s25, 0 }
  0x73   : > { %1809 = dma.done.wait (%p2570_p7), [#allocation6], 8224   ;;  %p2571_p3 = pmov %p2570_p7 }
  0x74   : > { %v2074_v0 = vld [vmem:[%s2063_s15] sm:$0xff]  ;;  %v2077_v1 = vld [vmem:[%s2063_s15 + $0x8] sm:$0xff]  ;;  %v2088_v5 = vld [vmem:[%s2063_s15 + $0x10] sm:$0xff]  ;;  %s2289_s11 = scalar_lea.vmem [#allocation9], %s1450_s17  ;;  %s1448_s30 = smul.u32 2560, %s1903_s25 }
  0x75   : > { %1811 = vsyncadd (%p2571_p3), [#allocation6], 4294959072  ;;  %v2080_v2 = vld [vmem:[%s2063_s15 + $0x20] sm:$0xff]  ;;  %v332_v3 = vadd.f32 %v2077_v1, %v2074_v0  ;;  %v2085_v4 = vld [vmem:[%s2063_s15 + $0x28] sm:$0xff]  ;;  %s1236_s16 = sshll.u32 %s2289_s11, 4  ;;  %s1205_s28 = scalar_lea.sflag [#allocation10], %s2057_s23  ;;  %s2362_s16 = int_to_ptr.vmem [resolvable:$true] %s1236_s16 }
  0x76   : > { %v2091_v6 = vld [vmem:[%s2063_s15 + $0x18] sm:$0xff]  ;;  %v338_v7 = vadd.f32 %v2085_v4, %v2080_v2  ;;  %v2096_v8 = vld [vmem:[%s2063_s15 + $0x30] sm:$0xff]  ;;  %v2106_v12 = vld [vmem:[%s2063_s15 + $0x40] sm:$0xff]  ;;  %s2367_s20 = scalar_lea.hbm %s2548_s6, %s1448_s30  ;;  %s1732_s29 = scalar_lea.vmem %s2362_s16, 2560 }
  0x77   : > { %v2099_v9 = vld [vmem:[%s2063_s15 + $0x38] sm:$0xff]  ;;  %333 = vadd.xlane.f32.xlu0 %v332_v3  ;;  %v335_v10 = vadd.f32 %v2091_v6, %v2088_v5  ;;  %v2109_v13 = vld [vmem:[%s2063_s15 + $0x48] sm:$0xff]  ;;  %v2112_v14 = vld [vmem:[%s2063_s15 + $0x50] sm:$0xff]  ;;  %p1733_p8 = scmp.ne.s32.totalorder %s2362_s16, %s1732_s29  ;;  %p2572_p4 = scmp.ne.s32.totalorder %s2560_s9, 0 }
  0x78   : > { %339 = vadd.xlane.f32.xlu1 %v338_v7  ;;  %v341_v11 = vadd.f32 %v2099_v9, %v2096_v8  ;;  %v2115_v15 = vld [vmem:[%s2063_s15 + $0x58] sm:$0xff]  ;;  %v2118_v16 = vld [vmem:[%s2063_s15 + $0x60] sm:$0xff]  ;;  %v2121_v17 = vld [vmem:[%s2063_s15 + $0x68] sm:$0xff]  ;;  %v344_v18 = vadd.f32 %v2109_v13, %v2106_v12  ;;  %s1841_s19 = smov [#allocation9]  }
  0x79   : > { %v2126_v19 = vld [vmem:[%s2063_s15 + $0x70] sm:$0xff]  ;;  %v2129_v20 = vld [vmem:[%s2063_s15 + $0x78] sm:$0xff]  ;;  %v347_v21 = vadd.f32 %v2115_v15, %v2112_v14  ;;  %v2134_v22 = vld [vmem:[%s2063_s15 + $0x80] sm:$0xff]  ;;  %v350_v24 = vadd.f32 %v2121_v17, %v2118_v16  ;;  %p1734_p5 = pnand %p1733_p8, %p2572_p4  ;;  %s1736_s26 = sshll.u32 %s1841_s19, 4  ;;  %s1737_s26 = int_to_ptr.vmem [resolvable:$false] %s1736_s26 }
  0x7a   : > { %v2137_v23 = vld [vmem:[%s2063_s15 + $0x88] sm:$0xff]  ;;  %v2142_v25 = vld [vmem:[%s2063_s15 + $0x90] sm:$0xff]  ;;  %v2145_v26 = vld [vmem:[%s2063_s15 + $0x98] sm:$0xff]  ;;  %v353_v27 = vadd.f32 %v2129_v20, %v2126_v19  ;;  %s1738_s7 = scalar_lea.vmem %s1737_s26, 5120  ;;  %p1739_p2 = scmp.lt.s32.totalorder %s2362_s16, %s1737_s26 }
  0x7b   : > { %336 = vadd.xlane.f32.xlu0 %v335_v10  ;;  %v356_v28 = vadd.f32 %v2137_v23, %v2134_v22  ;;  %v359_v29 = vadd.f32 %v2145_v26, %v2142_v25  ;;  %v1530_v30 = vld [vmem:[#allocation7 + $0x4] ss:$16 sps:$4 sm:$0xff]   ;;  %v1532_v31 = vld [vmem:[#allocation7 + $0xc] ss:$16 sps:$4 sm:$0xff]   ;;  %v1534_v32 = vld [vmem:[#allocation7] ss:$16 sps:$4 sm:$0xff]   ;;  %p1735_p10 = pneg %p1734_p5  ;;  %p1740_p0 = scmp.lt.s32.totalorder %s1738_s7, %s1732_s29 }
  0x7c   : > { %342 = vadd.xlane.f32.xlu1 %v341_v11  ;;  %v1535_v33 = vld [vmem:[#allocation7 + $0x8] ss:$16 sps:$4 sm:$0xff]   ;;  %v1536_v34 = vld [vmem:[#allocation7 + $0x24] ss:$16 sps:$4 sm:$0xff]   ;;  %v1538_v35 = vld [vmem:[#allocation7 + $0x2c] ss:$16 sps:$4 sm:$0xff]   ;;  %993 = vmatprep.subr.bf16.mxu0 %v1530_v30 }
  0x7d   : > { %1076 = vmatprep.subr.bf16.mxu1 %v1532_v31  ;;  %994 = vmatpush1.bf16.msra.mxu0 %v1534_v32  ;;  %v1540_v36 = vld [vmem:[#allocation7 + $0x20] ss:$16 sps:$4 sm:$0xff]   ;;  %v1541_v37 = vld [vmem:[#allocation7 + $0x28] ss:$16 sps:$4 sm:$0xff]   ;;  %v1542_v38 = vld [vmem:[#allocation7 + $0x44] ss:$16 sps:$4 sm:$0xff]   ;;  %p1741_p9 = por %p1740_p0, %p1739_p2 }
  0x7e   : > { %1077 = vmatpush1.bf16.msra.mxu1 %v1535_v33  ;;  %995 = vmatprep.subr.bf16.mxu0 %v1536_v34  ;;  %v1544_v39 = vld [vmem:[#allocation7 + $0x4c] ss:$16 sps:$4 sm:$0xff]   ;;  %v1546_v40 = vld [vmem:[#allocation7 + $0x40] ss:$16 sps:$4 sm:$0xff]   ;;  %v1547_v41 = vld [vmem:[#allocation7 + $0x48] ss:$16 sps:$4 sm:$0xff]  }
  0x7f   : > { %345 = vadd.xlane.f32.xlu0 %v344_v18  ;;  %1078 = vmatprep.subr.bf16.mxu1 %v1538_v35  ;;  %v1548_v42 = vld [vmem:[#allocation7 + $0x64] ss:$16 sps:$4 sm:$0xff]   ;;  %v1550_v43 = vld [vmem:[#allocation7 + $0x6c] ss:$16 sps:$4 sm:$0xff]   ;;  %v1552_v44 = vld [vmem:[#allocation7 + $0x60] ss:$16 sps:$4 sm:$0xff]   ;;  %p1742_p6 = pnand %p1741_p9, %p1735_p10 }
  0x80   : > { %348 = vadd.xlane.f32.xlu1 %v347_v21  ;;  %v1553_v45 = vld [vmem:[#allocation7 + $0x68] ss:$16 sps:$4 sm:$0xff]   ;;  %v1554_v46 = vld [vmem:[#allocation7 + $0x84] ss:$16 sps:$4 sm:$0xff]   ;;  %v1556_v47 = vld [vmem:[#allocation7 + $0x8c] ss:$16 sps:$4 sm:$0xff]  }
  0x81   : > { %996 = vmatpush1.bf16.msra.mxu0 %v1540_v36  ;;  %v1558_v48 = vld [vmem:[#allocation7 + $0x80] ss:$16 sps:$4 sm:$0xff]   ;;  %v1559_v49 = vld [vmem:[#allocation7 + $0x88] ss:$16 sps:$4 sm:$0xff]   ;;  %v1560_v50 = vld [vmem:[#allocation7 + $0xa4] ss:$16 sps:$4 sm:$0xff]  }
  0x82   : > { %1079 = vmatpush1.bf16.msra.mxu1 %v1541_v37  ;;  %997 = vmatprep.subr.bf16.mxu0 %v1542_v38  ;;  %v1562_v51 = vld [vmem:[#allocation7 + $0xac] ss:$16 sps:$4 sm:$0xff]   ;;  %v1564_v52 = vld [vmem:[#allocation7 + $0xa0] ss:$16 sps:$4 sm:$0xff]   ;;  %v1565_v53 = vld [vmem:[#allocation7 + $0xa8] ss:$16 sps:$4 sm:$0xff]  }
  0x83   : > { %351 = vadd.xlane.f32.xlu0 %v350_v24  ;;  %1080 = vmatprep.subr.bf16.mxu1 %v1544_v39  ;;  %v1566_v54 = vld [vmem:[#allocation7 + $0xc4] ss:$16 sps:$4 sm:$0xff]   ;;  %v1568_v55 = vld [vmem:[#allocation7 + $0xcc] ss:$16 sps:$4 sm:$0xff]   ;;  %v1570_v56 = vld [vmem:[#allocation7 + $0xc0] ss:$16 sps:$4 sm:$0xff]  }
  0x84   : > { %354 = vadd.xlane.f32.xlu1 %v353_v27  ;;  %v1571_v57 = vld [vmem:[#allocation7 + $0xc8] ss:$16 sps:$4 sm:$0xff]   ;;  %v1572_v58 = vld [vmem:[#allocation7 + $0xe4] ss:$16 sps:$4 sm:$0xff]   ;;  %v1574_v59 = vld [vmem:[#allocation7 + $0xec] ss:$16 sps:$4 sm:$0xff]  }
  0x85   : > { %998 = vmatpush1.bf16.msra.mxu0 %v1546_v40  ;;  %v1576_v60 = vld [vmem:[#allocation7 + $0xe0] ss:$16 sps:$4 sm:$0xff]   ;;  %v1577_v61 = vld [vmem:[#allocation7 + $0xe8] ss:$16 sps:$4 sm:$0xff]   ;;  %v1578_v62 = vld [vmem:[#allocation7 + $0x104] ss:$16 sps:$4 sm:$0xff]  }
  0x86   : > { %1081 = vmatpush1.bf16.msra.mxu1 %v1547_v41  ;;  %999 = vmatprep.subr.bf16.mxu0 %v1548_v42  ;;  %v1580_v63 = vld [vmem:[#allocation7 + $0x10c] ss:$16 sps:$4 sm:$0xff]   ;;  %v1582_v3 = vld [vmem:[#allocation7 + $0x100] ss:$16 sps:$4 sm:$0xff]   ;;  %v1583_v7 = vld [vmem:[#allocation7 + $0x108] ss:$16 sps:$4 sm:$0xff]  }
  0x87   : > { %357 = vadd.xlane.f32.xlu0 %v356_v28  ;;  %1082 = vmatprep.subr.bf16.mxu1 %v1550_v43 }
  0x88   : > { %360 = vadd.xlane.f32.xlu1 %v359_v29 }
  0x89   : > { %1000 = vmatpush1.bf16.msra.mxu0 %v1552_v44 }
  0x8a   : > { %1083 = vmatpush1.bf16.msra.mxu1 %v1553_v45  ;;  %1001 = vmatprep.subr.bf16.mxu0 %v1554_v46 }
  0x8b   : > { %1084 = vmatprep.subr.bf16.mxu1 %v1556_v47 }
  0x8d   : > { %1002 = vmatpush1.bf16.msra.mxu0 %v1558_v48 }
  0x8e   : > { %1085 = vmatpush1.bf16.msra.mxu1 %v1559_v49  ;;  %1003 = vmatprep.subr.bf16.mxu0 %v1560_v50 }
  0x8f   : > { %1086 = vmatprep.subr.bf16.mxu1 %v1562_v51 }
  0x91   : > { %1004 = vmatpush1.bf16.msra.mxu0 %v1564_v52 }
  0x92   : > { %1087 = vmatpush1.bf16.msra.mxu1 %v1565_v53  ;;  %1005 = vmatprep.subr.bf16.mxu0 %v1566_v54 }
  0x93   : > { %1088 = vmatprep.subr.bf16.mxu1 %v1568_v55 }
  0x95   : > { %1006 = vmatpush1.bf16.msra.mxu0 %v1570_v56 }
  0x96   : > { %1089 = vmatpush1.bf16.msra.mxu1 %v1571_v57  ;;  %1007 = vmatprep.subr.bf16.mxu0 %v1572_v58 }
  0x97   : > { %1090 = vmatprep.subr.bf16.mxu1 %v1574_v59 }
  0x99   : > { %1008 = vmatpush1.bf16.msra.mxu0 %v1576_v60 }
  0x9a   : > { %1091 = vmatpush1.bf16.msra.mxu1 %v1577_v61  ;;  %1009 = vmatprep.subr.bf16.mxu0 %v1578_v62 }
  0x9b   : > { %1092 = vmatprep.subr.bf16.mxu1 %v1580_v63 }
  0x9d   : > { %1010 = vmatpush1.bf16.msra.mxu0 %v1582_v3 }
  0x9e   : > { %1093 = vmatpush1.bf16.msra.mxu1 %v1583_v7 }
 0x104   : > { %v334_v10 = vpop.xlane.xlu0 %333 }
 0x105   : > { %v363_v11 = vmul.f32 0.00390625, %v334_v10  ;;  %v340_v18 = vpop.xlane.xlu1 %339 }
 0x106   : > { %v365_v21 = vmul.f32 0.00390625, %v340_v18 }
 0x107   : > { %v2154_v24 = vsub.f32 %v2074_v0, %v363_v11  ;;  %v2157_v27 = vsub.f32 %v2077_v1, %v363_v11 }
 0x108   : > { %v2160_v28 = vsub.f32 %v2080_v2, %v365_v21  ;;  %v2163_v29 = vsub.f32 %v2085_v4, %v365_v21  ;;  %v337_v30 = vpop.xlane.xlu0 %336 }
 0x109   : > { %v364_v31 = vmul.f32 0.00390625, %v337_v30  ;;  %v343_v32 = vpop.xlane.xlu1 %342  ;;  %v393_v33 = vmul.f32 %v2154_v24, %v2154_v24  ;;  %v394_v34 = vmul.f32 %v2157_v27, %v2157_v27 }
 0x10a   : > { %v366_v0 = vmul.f32 0.00390625, %v343_v32  ;;  %v397_v1 = vmul.f32 %v2160_v28, %v2160_v28  ;;  %v398_v2 = vmul.f32 %v2163_v29, %v2163_v29  ;;  %v1586_v32 = vld [vmem:[#allocation7 + $0x12c] ss:$16 sps:$4 sm:$0xff]  }
 0x10b   : > { %v2174_v35 = vsub.f32 %v2088_v5, %v364_v31  ;;  %v2177_v4 = vsub.f32 %v2091_v6, %v364_v31  ;;  %v413_v36 = vadd.f32 %v394_v34, %v393_v33  ;;  %v1584_v31 = vld [vmem:[#allocation7 + $0x124] ss:$16 sps:$4 sm:$0xff]   ;;  %v1588_v33 = vld [vmem:[#allocation7 + $0x120] ss:$16 sps:$4 sm:$0xff]   ;;  %1094 = vmatprep.subr.bf16.mxu1 %v1586_v32 }
 0x10c   : > { %v2180_v37 = vsub.f32 %v2096_v8, %v366_v0  ;;  %v2183_v38 = vsub.f32 %v2099_v9, %v366_v0  ;;  %v346_v39 = vpop.xlane.xlu0 %345  ;;  %v419_v42 = vadd.f32 %v398_v2, %v397_v1  ;;  %1011 = vmatprep.subr.bf16.mxu0 %v1584_v31  ;;  %v1590_v1 = vld [vmem:[#allocation7 + $0x144] ss:$16 sps:$4 sm:$0xff]   ;;  %v1592_v2 = vld [vmem:[#allocation7 + $0x14c] ss:$16 sps:$4 sm:$0xff]  }
 0x10d   : > { %v367_v40 = vmul.f32 0.00390625, %v346_v39  ;;  %414 = vadd.xlane.f32.xlu0 %v413_v36  ;;  %v349_v41 = vpop.xlane.xlu1 %348  ;;  %v395_v43 = vmul.f32 %v2174_v35, %v2174_v35  ;;  %v396_v5 = vmul.f32 %v2177_v4, %v2177_v4  ;;  %1012 = vmatpush1.bf16.msra.mxu0 %v1588_v33  ;;  %v1594_v36 = vld [vmem:[#allocation7 + $0x140] ss:$16 sps:$4 sm:$0xff]   ;;  %v1595_v39 = vld [vmem:[#allocation7 + $0x148] ss:$16 sps:$4 sm:$0xff]  }
 0x10e   : > { %v368_v6 = vmul.f32 0.00390625, %v349_v41  ;;  %v399_v44 = vmul.f32 %v2180_v37, %v2180_v37  ;;  %v400_v8 = vmul.f32 %v2183_v38, %v2183_v38  ;;  %1013 = vmatprep.subr.bf16.mxu0 %v1590_v1  ;;  %v1598_v41 = vld [vmem:[#allocation7 + $0x16c] ss:$16 sps:$4 sm:$0xff]  }
 0x10f   : > { %v2194_v9 = vsub.f32 %v2106_v12, %v367_v40  ;;  %v2197_v45 = vsub.f32 %v2109_v13, %v367_v40  ;;  %v416_v46 = vadd.f32 %v396_v5, %v395_v43  ;;  %v1596_v40 = vld [vmem:[#allocation7 + $0x164] ss:$16 sps:$4 sm:$0xff]   ;;  %v1601_v43 = vld [vmem:[#allocation7 + $0x168] ss:$16 sps:$4 sm:$0xff]  }
 0x110   : > { %v2200_v47 = vsub.f32 %v2112_v14, %v368_v6  ;;  %v2203_v48 = vsub.f32 %v2115_v15, %v368_v6  ;;  %v352_v49 = vpop.xlane.xlu0 %351  ;;  %v422_v52 = vadd.f32 %v400_v8, %v399_v44  ;;  %v1602_v5 = vld [vmem:[#allocation7 + $0x184] ss:$16 sps:$4 sm:$0xff]   ;;  %v1604_v6 = vld [vmem:[#allocation7 + $0x18c] ss:$16 sps:$4 sm:$0xff]   ;;  %v1606_v44 = vld [vmem:[#allocation7 + $0x180] ss:$16 sps:$4 sm:$0xff]  }
 0x111   : > { %v369_v50 = vmul.f32 0.00390625, %v352_v49  ;;  %420 = vadd.xlane.f32.xlu0 %v419_v42  ;;  %417 = vadd.xlane.f32.xlu1 %v416_v46  ;;  %v355_v51 = vpop.xlane.xlu1 %354  ;;  %v401_v12 = vmul.f32 %v2194_v9, %v2194_v9  ;;  %v402_v13 = vmul.f32 %v2197_v45, %v2197_v45  ;;  %v1600_v42 = vld [vmem:[#allocation7 + $0x160] ss:$16 sps:$4 sm:$0xff]   ;;  %v1607_v8 = vld [vmem:[#allocation7 + $0x188] ss:$16 sps:$4 sm:$0xff]  }
 0x112   : > { %v370_v53 = vmul.f32 0.00390625, %v355_v51  ;;  %v403_v14 = vmul.f32 %v2200_v47, %v2200_v47  ;;  %v404_v15 = vmul.f32 %v2203_v48, %v2203_v48  ;;  %1014 = vmatpush1.bf16.msra.mxu0 %v1594_v36  ;;  %v1608_v46 = vld [vmem:[#allocation7 + $0x1a4] ss:$16 sps:$4 sm:$0xff]   ;;  %v1610_v49 = vld [vmem:[#allocation7 + $0x1ac] ss:$16 sps:$4 sm:$0xff]  }
 0x113   : > { %v2214_v54 = vsub.f32 %v2118_v16, %v369_v50  ;;  %v2217_v55 = vsub.f32 %v2121_v17, %v369_v50  ;;  %v425_v56 = vadd.f32 %v402_v13, %v401_v12  ;;  %1015 = vmatprep.subr.bf16.mxu0 %v1596_v40  ;;  %v1612_v50 = vld [vmem:[#allocation7 + $0x1a0] ss:$16 sps:$4 sm:$0xff]   ;;  %v1613_v51 = vld [vmem:[#allocation7 + $0x1a8] ss:$16 sps:$4 sm:$0xff]   ;;  %v1616_v12 = vld [vmem:[#allocation7 + $0x1cc] ss:$16 sps:$4 sm:$0xff]  }
 0x114   : > { %v2220_v57 = vsub.f32 %v2126_v19, %v370_v53  ;;  %v2223_v58 = vsub.f32 %v2129_v20, %v370_v53  ;;  %v358_v59 = vpop.xlane.xlu0 %357  ;;  %v428_v62 = vadd.f32 %v404_v15, %v403_v14  ;;  %v1618_v13 = vld [vmem:[#allocation7 + $0x1c0] ss:$16 sps:$4 sm:$0xff]   ;;  %v1619_v53 = vld [vmem:[#allocation7 + $0x1c8] ss:$16 sps:$4 sm:$0xff]   ;;  %v1620_v14 = vld [vmem:[#allocation7 + $0x1e4] ss:$16 sps:$4 sm:$0xff]  }
 0x115   : > { %v371_v60 = vmul.f32 0.00390625, %v358_v59  ;;  %423 = vadd.xlane.f32.xlu1 %v422_v52  ;;  %426 = vadd.xlane.f32.xlu0 %v425_v56  ;;  %v361_v61 = vpop.xlane.xlu1 %360  ;;  %v405_v16 = vmul.f32 %v2214_v54, %v2214_v54  ;;  %v406_v17 = vmul.f32 %v2217_v55, %v2217_v55  ;;  %v1614_v52 = vld [vmem:[#allocation7 + $0x1c4] ss:$16 sps:$4 sm:$0xff]   ;;  %v1622_v15 = vld [vmem:[#allocation7 + $0x1ec] ss:$16 sps:$4 sm:$0xff]  }
 0x116   : > { %v372_v63 = vmul.f32 0.00390625, %v361_v61  ;;  %v407_v19 = vmul.f32 %v2220_v57, %v2220_v57  ;;  %v408_v20 = vmul.f32 %v2223_v58, %v2223_v58  ;;  %1016 = vmatpush1.bf16.msra.mxu0 %v1600_v42  ;;  %v1624_v56 = vld [vmem:[#allocation7 + $0x1e0] ss:$16 sps:$4 sm:$0xff]   ;;  %v1625_v59 = vld [vmem:[#allocation7 + $0x1e8] ss:$16 sps:$4 sm:$0xff]  }
 0x117   : > { %v2234_v3 = vsub.f32 %v2134_v22, %v371_v60  ;;  %v2237_v7 = vsub.f32 %v2137_v23, %v371_v60  ;;  %v431_v10 = vadd.f32 %v406_v17, %v405_v16  ;;  %1017 = vmatprep.subr.bf16.mxu0 %v1602_v5  ;;  %v525_v40 = vld [vmem:[#allocation5] sm:$0x3] }
 0x118   : > { %v2240_v11 = vsub.f32 %v2142_v25, %v372_v63  ;;  %v2243_v18 = vsub.f32 %v2145_v26, %v372_v63  ;;  %v434_v21 = vadd.f32 %v408_v20, %v407_v19  ;;  %v1589_v26 = vld [vmem:[#allocation7 + $0x128] ss:$16 sps:$4 sm:$0xff]  }
 0x119   : > { %429 = vadd.xlane.f32.xlu1 %v428_v62  ;;  %432 = vadd.xlane.f32.xlu0 %v431_v10  ;;  %v409_v30 = vmul.f32 %v2234_v3, %v2234_v3  ;;  %v410_v22 = vmul.f32 %v2237_v7, %v2237_v7  ;;  %v495_v62 = vlaneseq }
 0x11a   : > { %v411_v23 = vmul.f32 %v2240_v11, %v2240_v11  ;;  %v412_v25 = vmul.f32 %v2243_v18, %v2243_v18  ;;  %1095 = vmatpush1.bf16.msra.mxu1 %v1589_v26  ;;  %1018 = vmatpush1.bf16.msra.mxu0 %v1606_v44 }
 0x11b   : > { %v437_v34 = vadd.f32 %v410_v22, %v409_v30  ;;  %1096 = vmatprep.subr.bf16.mxu1 %v1592_v2  ;;  %1019 = vmatprep.subr.bf16.mxu0 %v1608_v46  ;;  %v2253_v10 = vshrl.u32 %v495_v62, 7 }
 0x11c   : > { %v440_v0 = vadd.f32 %v412_v25, %v411_v23 }
 0x11d   : > { %435 = vadd.xlane.f32.xlu1 %v434_v21  ;;  %438 = vadd.xlane.f32.xlu0 %v437_v34  ;;  %v2256_v25 = vsub.s32 0, %v2253_v10  ;;  %v2259_v33 = vsub.s32 1, %v2253_v10 }
 0x11e   : > { %1097 = vmatpush1.bf16.msra.mxu1 %v1595_v39  ;;  %1020 = vmatpush1.bf16.msra.mxu0 %v1612_v50 }
 0x11f   : > { %1098 = vmatprep.subr.bf16.mxu1 %v1598_v41  ;;  %1021 = vmatprep.subr.bf16.mxu0 %v1614_v52  ;;  %v2275_v50 = vrot.slane %v525_v40, %v2259_v33 }
 0x121   : > { %441 = vadd.xlane.f32.xlu1 %v440_v0  ;;  %v493_v0 = vld [vmem:[%s2543_s1] sm:$0x3] }
 0x122   : > { %1099 = vmatpush1.bf16.msra.mxu1 %v1601_v43  ;;  %1022 = vmatpush1.bf16.msra.mxu0 %v1618_v13  ;;  %v2265_v41 = vrot.slane %v493_v0, %v2256_v25  ;;  %v2268_v42 = vrot.slane %v493_v0, %v2259_v33 }
 0x123   : > { %1100 = vmatprep.subr.bf16.mxu1 %v1604_v6  ;;  %1023 = vmatprep.subr.bf16.mxu0 %v1620_v14 }
 0x126   : > { %1101 = vmatpush1.bf16.msra.mxu1 %v1607_v8  ;;  %1024 = vmatpush1.bf16.msra.mxu0 %v1624_v56 }
 0x127   : > { %1102 = vmatprep.subr.bf16.mxu1 %v1610_v49  ;;  %v2272_v49 = vrot.slane %v525_v40, %v2256_v25 }
 0x12a   : > { %1103 = vmatpush1.bf16.msra.mxu1 %v1613_v51 }
 0x12b   : > { %1104 = vmatprep.subr.bf16.mxu1 %v1616_v12 }
 0x12e   : > { %1105 = vmatpush1.bf16.msra.mxu1 %v1619_v53 }
 0x12f   : > { %1106 = vmatprep.subr.bf16.mxu1 %v1622_v15 }
 0x132   : > { %1107 = vmatpush1.bf16.msra.mxu1 %v1625_v59 }
 0x19a   : > { %v415_v60 = vpop.xlane.xlu0 %414 }
 0x19b   : > { %v443_v61 = vmul.f32 0.00390625, %v415_v60 }
 0x19d   : > { %v453_v16 = vadd.f32 1e-05, %v443_v61 }
 0x19e   : > { %v418_v17 = vpop.xlane.xlu1 %417  ;;  %v421_v63 = vpop.xlane.xlu0 %420 }
 0x19f   : > { %1626 = vrsqrt.f32 %v453_v16  ;;  %v444_v19 = vmul.f32 0.00390625, %v418_v17  ;;  %v445_v20 = vmul.f32 0.00390625, %v421_v63 }
 0x1a1   : > { %v454_v21 = vadd.f32 1e-05, %v444_v19  ;;  %v455_v30 = vadd.f32 1e-05, %v445_v20 }
 0x1a2   : > { %v424_v22 = vpop.xlane.xlu1 %423  ;;  %v427_v31 = vpop.xlane.xlu0 %426 }
 0x1a3   : > { %1628 = vrsqrt.f32 %v454_v21  ;;  %v446_v32 = vmul.f32 0.00390625, %v424_v22  ;;  %v447_v23 = vmul.f32 0.00390625, %v427_v31 }
 0x1a4   : > { %1630 = vrsqrt.f32 %v455_v30 }
 0x1a5   : > { %v456_v26 = vadd.f32 1e-05, %v446_v32  ;;  %v457_v34 = vadd.f32 1e-05, %v447_v23 }
 0x1a6   : > { %v430_v1 = vpop.xlane.xlu1 %429  ;;  %v433_v2 = vpop.xlane.xlu0 %432 }
 0x1a7   : > { %1632 = vrsqrt.f32 %v456_v26  ;;  %v448_v36 = vmul.f32 0.00390625, %v430_v1  ;;  %v449_v39 = vmul.f32 0.00390625, %v433_v2 }
 0x1a8   : > { %1634 = vrsqrt.f32 %v457_v34 }
 0x1a9   : > { %v1627_v43 = vpop.eup %1626  ;;  %v458_v5 = vadd.f32 1e-05, %v448_v36  ;;  %v459_v6 = vadd.f32 1e-05, %v449_v39 }
 0x1aa   : > { %v436_v44 = vpop.xlane.xlu1 %435  ;;  %v439_v8 = vpop.xlane.xlu0 %438  ;;  %v474_v46 = vmul.f32 %v1627_v43, %v2157_v27  ;;  %v473_v51 = vmul.f32 %v1627_v43, %v2154_v24 }
 0x1ab   : > { %1636 = vrsqrt.f32 %v458_v5  ;;  %v450_v52 = vmul.f32 0.00390625, %v436_v44  ;;  %v451_v12 = vmul.f32 0.00390625, %v439_v8 }
 0x1ac   : > { %1638 = vrsqrt.f32 %v459_v6  ;;  %v506_v13 = vmul.f32 %v2268_v42, %v474_v46  ;;  %v505_v53 = vmul.f32 %v2265_v41, %v473_v51 }
 0x1ad   : > { %v1629_v14 = vpop.eup %1628  ;;  %v460_v15 = vadd.f32 1e-05, %v450_v52  ;;  %v461_v27 = vadd.f32 1e-05, %v451_v12 }
 0x1ae   : > { %v1631_v56 = vpop.eup %1630  ;;  %v442_v59 = vpop.xlane.xlu1 %441  ;;  %v476_v60 = vmul.f32 %v1629_v14, %v2177_v4  ;;  %v538_v61 = vadd.f32 %v2275_v50, %v506_v13  ;;  %v475_v24 = vmul.f32 %v1629_v14, %v2174_v35  ;;  %v537_v62 = vadd.f32 %v2272_v49, %v505_v53 }
 0x1af   : > { %1640 = vrsqrt.f32 %v460_v15  ;;  %v452_v16 = vmul.f32 0.00390625, %v442_v59  ;;  %v478_v17 = vmul.f32 %v1631_v56, %v2163_v29  ;;  %v477_v63 = vmul.f32 %v1631_v56, %v2160_v28 }
 0x1b0   : > { %1642 = vrsqrt.f32 %v461_v27  ;;  %v508_v19 = vmul.f32 %v2268_v42, %v476_v60  ;;  %558 = vst [vmem:[%s2289_s11 + $0x8] sm:$0xff] %v538_v61  ;;  %v507_v35 = vmul.f32 %v2265_v41, %v475_v24  ;;  %557 = vst [vmem:[%s2289_s11] sm:$0xff] %v537_v62 }
 0x1b1   : > { %v1633_v4 = vpop.eup %1632  ;;  %v462_v20 = vadd.f32 1e-05, %v452_v16  ;;  %v510_v29 = vmul.f32 %v2268_v42, %v478_v17  ;;  %v509_v28 = vmul.f32 %v2265_v41, %v477_v63 }
 0x1b2   : > { %v1635_v21 = vpop.eup %1634  ;;  %v540_v30 = vadd.f32 %v2275_v50, %v508_v19  ;;  %v539_v22 = vadd.f32 %v2272_v49, %v507_v35  ;;  %v480_v31 = vmul.f32 %v1633_v4, %v2183_v38  ;;  %v479_v32 = vmul.f32 %v1633_v4, %v2180_v37 }
 0x1b3   : > { %1644 = vrsqrt.f32 %v462_v20  ;;  %v542_v23 = vadd.f32 %v2275_v50, %v510_v29  ;;  %v541_v26 = vadd.f32 %v2272_v49, %v509_v28  ;;  %v482_v34 = vmul.f32 %v1635_v21, %v2197_v45 }
 0x1b4   : > { %560 = vst [vmem:[%s2289_s11 + $0x18] sm:$0xff] %v540_v30  ;;  %v578_v0 = vpack.c.bf16 %v540_v30, %v538_v61  ;;  %559 = vst [vmem:[%s2289_s11 + $0x10] sm:$0xff] %v539_v22  ;;  %v577_v1 = vpack.c.bf16 %v539_v22, %v537_v62  ;;  %v512_v2 = vmul.f32 %v2268_v42, %v480_v31 }
 0x1b5   : > { %v511_v36 = vmul.f32 %v2265_v41, %v479_v32  ;;  %v1637_v39 = vpop.eup %1636  ;;  %562 = vst [vmem:[%s2289_s11 + $0x28] sm:$0xff] %v542_v23  ;;  %561 = vst [vmem:[%s2289_s11 + $0x20] sm:$0xff] %v541_v26  ;;  %v514_v37 = vmul.f32 %v2268_v42, %v482_v34  ;;  %v481_v38 = vmul.f32 %v1635_v21, %v2194_v9 }
 0x1b6   : > { %v1639_v40 = vpop.eup %1638  ;;  %1025 = vmatprep.mubr.bf16.mxu0 %v578_v0  ;;  %1108 = vmatprep.mubr.bf16.mxu1 %v578_v0  ;;  %v544_v45 = vadd.f32 %v2275_v50, %v512_v2  ;;  %v484_v5 = vmul.f32 %v1637_v39, %v2203_v48  ;;  %v483_v44 = vmul.f32 %v1637_v39, %v2200_v47 }
 0x1b7   : > { %v543_v43 = vadd.f32 %v2272_v49, %v511_v36  ;;  %1026 = vmatmul.mubr.bf16.vlgmr.msra.gmra.mrb[0].mxu0 %v577_v1  ;;  %1109 = vmatmul.mubr.bf16.vlgmr.msra.gmra.mrb[0].mxu1 %v577_v1  ;;  %v546_v6 = vadd.f32 %v2275_v50, %v514_v37  ;;  %v513_v8 = vmul.f32 %v2265_v41, %v481_v38 }
 0x1b8   : > { %564 = vst [vmem:[%s2289_s11 + $0x38] sm:$0xff] %v544_v45  ;;  %v580_v9 = vpack.c.bf16 %v544_v45, %v542_v23  ;;  %v516_v46 = vmul.f32 %v2268_v42, %v484_v5  ;;  %v486_v51 = vmul.f32 %v1639_v40, %v2217_v55  ;;  %v515_v48 = vmul.f32 %v2265_v41, %v483_v44 }
 0x1b9   : > { %563 = vst [vmem:[%s2289_s11 + $0x30] sm:$0xff] %v543_v43  ;;  %v1641_v52 = vpop.eup %1640  ;;  %566 = vst [vmem:[%s2289_s11 + $0x48] sm:$0xff] %v546_v6  ;;  %v545_v12 = vadd.f32 %v2272_v49, %v513_v8  ;;  %v485_v13 = vmul.f32 %v1639_v40, %v2214_v54  ;;  %v579_v59 = vpack.c.bf16 %v543_v43, %v541_v26 }
 0x1ba   : > { %v1643_v47 = vpop.eup %1642  ;;  %1035 = vmatprep.mubr.bf16.mxu0 %v580_v9  ;;  %1118 = vmatprep.mubr.bf16.mxu1 %v580_v9  ;;  %v548_v53 = vadd.f32 %v2275_v50, %v516_v46  ;;  %v488_v14 = vmul.f32 %v1641_v52, %v2223_v58  ;;  %v518_v15 = vmul.f32 %v2268_v42, %v486_v51 }
 0x1bb   : > { %v547_v55 = vadd.f32 %v2272_v49, %v515_v48  ;;  %565 = vst [vmem:[%s2289_s11 + $0x40] sm:$0xff] %v545_v12  ;;  %v487_v27 = vmul.f32 %v1641_v52, %v2220_v57  ;;  %v517_v56 = vmul.f32 %v2265_v41, %v485_v13  ;;  %v490_v54 = vmul.f32 %v1643_v47, %v2237_v7 }
 0x1bc   : > { %568 = vst [vmem:[%s2289_s11 + $0x58] sm:$0xff] %v548_v53  ;;  %v520_v60 = vmul.f32 %v2268_v42, %v488_v14  ;;  %v550_v61 = vadd.f32 %v2275_v50, %v518_v15  ;;  %v489_v58 = vmul.f32 %v1643_v47, %v2234_v3  ;;  %v582_v62 = vpack.c.bf16 %v548_v53, %v546_v6 }
 0x1bd   : > { %v1645_v24 = vpop.eup %1644  ;;  %567 = vst [vmem:[%s2289_s11 + $0x50] sm:$0xff] %v547_v55  ;;  %v519_v16 = vmul.f32 %v2265_v41, %v487_v27  ;;  %v549_v57 = vadd.f32 %v2272_v49, %v517_v56  ;;  %v522_v17 = vmul.f32 %v2268_v42, %v490_v54  ;;  %v581_v21 = vpack.c.bf16 %v547_v55, %v545_v12 }
 0x1be   : > { %v552_v7 = vadd.f32 %v2275_v50, %v520_v60  ;;  %570 = vst [vmem:[%s2289_s11 + $0x68] sm:$0xff] %v550_v61  ;;  %v492_v63 = vmul.f32 %v1645_v24, %v2243_v18  ;;  %v491_v19 = vmul.f32 %v1645_v24, %v2240_v11  ;;  %v521_v3 = vmul.f32 %v2265_v41, %v489_v58 }
 0x1bf   : > { %1036 = vmatmul.mubr.bf16.gmra.mrb[4].mxu0 %v579_v59  ;;  %1119 = vmatmul.mubr.bf16.gmra.mrb[4].mxu1 %v579_v59  ;;  %v551_v35 = vadd.f32 %v2272_v49, %v519_v16  ;;  %569 = vst [vmem:[%s2289_s11 + $0x60] sm:$0xff] %v549_v57  ;;  %v554_v4 = vadd.f32 %v2275_v50, %v522_v17 }
 0x1c0   : > { %1045 = vmatprep.mubr.bf16.mxu0 %v582_v62  ;;  %1128 = vmatprep.mubr.bf16.mxu1 %v582_v62  ;;  %572 = vst [vmem:[%s2289_s11 + $0x78] sm:$0xff] %v552_v7  ;;  %v524_v20 = vmul.f32 %v2268_v42, %v492_v63  ;;  %v523_v18 = vmul.f32 %v2265_v41, %v491_v19 }
 0x1c1   : > { %571 = vst [vmem:[%s2289_s11 + $0x70] sm:$0xff] %v551_v35  ;;  %574 = vst [vmem:[%s2289_s11 + $0x88] sm:$0xff] %v554_v4  ;;  %v553_v11 = vadd.f32 %v2272_v49, %v521_v3  ;;  %v584_v30 = vpack.c.bf16 %v552_v7, %v550_v61  ;;  %v583_v41 = vpack.c.bf16 %v551_v35, %v549_v57 }
 0x1c2   : > { %v556_v29 = vadd.f32 %v2275_v50, %v524_v20  ;;  %v555_v28 = vadd.f32 %v2272_v49, %v523_v18 }
 0x1c3   : > { %573 = vst [vmem:[%s2289_s11 + $0x80] sm:$0xff] %v553_v11 }
 0x1c4   : > { %576 = vst [vmem:[%s2289_s11 + $0x98] sm:$0xff] %v556_v29  ;;  %575 = vst [vmem:[%s2289_s11 + $0x90] sm:$0xff] %v555_v28  ;;  %v586_v42 = vpack.c.bf16 %v556_v29, %v554_v4  ;;  %v585_v49 = vpack.c.bf16 %v555_v28, %v553_v11 }
 0x1c7   : > { %1046 = vmatmul.mubr.bf16.gmra.mrb[8].mxu0 %v581_v21  ;;  %1129 = vmatmul.mubr.bf16.gmra.mrb[8].mxu1 %v581_v21 }
 0x1c8   : > { %1055 = vmatprep.mubr.bf16.mxu0 %v584_v30  ;;  %1138 = vmatprep.mubr.bf16.mxu1 %v584_v30 }
 0x1cf   : > { %1056 = vmatmul.mubr.bf16.gmra.mrb[12].mxu0 %v583_v41  ;;  %1139 = vmatmul.mubr.bf16.gmra.mrb[12].mxu1 %v583_v41 }
 0x1d0   : > { %1065 = vmatprep.mubr.bf16.mxu0 %v586_v42  ;;  %1148 = vmatprep.mubr.bf16.mxu1 %v586_v42 }
 0x1d7   : > { %1066 = vmatmul.mubr.bf16.gmra.mrb[16].mxu0 %v585_v49  ;;  %1149 = vmatmul.mubr.bf16.gmra.mrb[16].mxu1 %v585_v49 }
 0x1d8   : > { %1745 = shalt.err (!%p1742_p6)
}
 0x1d9   : > { %s1746_s13 = scalar_lea.hbm %s2367_s20, 2560  ;;  %s1750_s15 = scalar_lea.hbm %s2548_s6, 5120 }
 0x1da   : > { %p1747_p12 = scmp.ne.s32.totalorder %s2367_s20, %s1746_s13  ;;  %p1751_p11 = scmp.lt.u32.totalorder %s2367_s20, %s2548_s6 }
 0x1db   : > { %p1752_p7 = scmp.lt.u32.totalorder %s1750_s15, %s1746_s13  ;;  %p1754_p8 = scmp.lt.u32.totalorder %s1746_s13, %s2367_s20 }
 0x1dc   : > { %p1748_p13 = pnand %p1747_p12, %p2572_p4 }
 0x1dd   : > { %p1753_p3 = por %p1752_p7, %p1751_p11 }
 0x1de   : > { %p1749_p1 = pneg %p1748_p13 }
 0x1df   : > { %p1755_p5 = por %p1754_p8, %p1753_p3 }
 0x1e1   : > { %p1756_p10 = pnand %p1755_p5, %p1749_p1 }
 0x1e3   : > { %1759 = shalt.err (!%p1756_p10)
}
 0x1e4   : > { %s1842_s11 = smov 256   ;;  %s1843_s30 = smov 16   ;;  %v663_v50 = vsub.s32 2, %v2253_v10  ;;  %v651_v22 = vld [vmem:[%s2546_s4] sm:$0xf]  ;;  %v667_v31 = vsub.s32 3, %v2253_v10 }
 0x1e5   : > { %1463 = dma.vmem_to_hbm [thread:$0]  (%p2572_p4), %s2362_s16, 2560, %s2367_s20, %s1205_s28, %s1842_s11, %s1842_s11, %s1843_s30   ;;  %v2400_v32 = vrot.slane %v651_v22, %v2256_v25  ;;  %v2405_v26 = vrot.slane %v651_v22, %v2259_v33 }
 0x1e6   : > { %s1451_s29 = smul.u32 320, %s2057_s23  ;;  %v2402_v23 = vrot.slane %v651_v22, %v663_v50  ;;  %v2407_v34 = vrot.slane %v651_v22, %v667_v31  ;;  %s1200_s7 = scalar_lea.sflag [#allocation4], %s2057_s23 }
 0x1e7   : > { %s1447_s20 = smul.u32 5120, %s1903_s25  ;;  %s1844_s17 = smov [#allocation8]  }
 0x1e8   : > { %s2413_s16 = scalar_lea.vmem [#allocation8], %s1451_s29  ;;  %s1764_s18 = sshll.u32 %s1844_s17, 4  ;;  %s1765_s18 = int_to_ptr.vmem [resolvable:$false] %s1764_s18 }
 0x1e9   : > { %s1219_s28 = sshll.u32 %s2413_s16, 4  ;;  %s2488_s26 = scalar_lea.hbm %s2547_s5, %s1447_s20  ;;  %s2494_s28 = int_to_ptr.vmem [resolvable:$true] %s1219_s28 }
 0x1ea   : > { %s1760_s13 = scalar_lea.vmem %s2494_s28, 5120  ;;  %s1766_s15 = scalar_lea.vmem %s1765_s18, 10240 }
 0x1eb   : > { %p1761_p2 = scmp.ne.s32.totalorder %s2494_s28, %s1760_s13  ;;  %p1767_p6 = scmp.lt.s32.totalorder %s2494_s28, %s1765_s18 }
 0x1ec   : > { %p1768_p12 = scmp.lt.s32.totalorder %s1766_s15, %s1760_s13 }
 0x1ed   : > { %p1762_p0 = pnand %p1761_p2, %p2572_p4 }
 0x1ee   : > { %p1769_p13 = por %p1768_p12, %p1767_p6 }
 0x1ef   : > { %p1763_p9 = pneg %p1762_p0 }
 0x1f1   : > { %p1770_p1 = pnand %p1769_p13, %p1763_p9 }
 0x28a   : > { %v1027_v0 = vpop.f32.mrb[0].mxu0  ;;  %v1110_v1 = vpop.f32.mrb[0].mxu1 }
 0x28b   : > { %v1028_v2 = vadd.f32 %v1027_v0, %v2400_v32  ;;  %v1111_v36 = vadd.f32 %v1110_v1, %v2402_v23  ;;  %v1029_v39 = vpop.f32.mrb[1].mxu0  ;;  %v1112_v37 = vpop.f32.mrb[1].mxu1 }
 0x28c   : > { %v1030_v10 = vadd.f32 %v1029_v39, %v2405_v26  ;;  %v1113_v25 = vadd.f32 %v1112_v37, %v2407_v34  ;;  %v1031_v38 = vpop.f32.mrb[2].mxu0  ;;  %v1114_v40 = vpop.f32.mrb[2].mxu1 }
 0x28d   : > { %1159 = vst [vmem:[%s2413_s16] sm:$0xff] %v1028_v2  ;;  %1161 = vst [vmem:[%s2413_s16 + $0x10] sm:$0xff] %v1111_v36  ;;  %v1032_v33 = vadd.f32 %v1031_v38, %v2400_v32  ;;  %v1115_v45 = vadd.f32 %v1114_v40, %v2402_v23  ;;  %v1033_v43 = vpop.f32.mrb[3].mxu0  ;;  %v1116_v5 = vpop.f32.mrb[3].mxu1 }
 0x28e   : > { %1160 = vst [vmem:[%s2413_s16 + $0x8] sm:$0xff] %v1030_v10  ;;  %1162 = vst [vmem:[%s2413_s16 + $0x18] sm:$0xff] %v1113_v25  ;;  %v1034_v6 = vadd.f32 %v1033_v43, %v2405_v26  ;;  %v1117_v44 = vadd.f32 %v1116_v5, %v2407_v34 }
 0x28f   : > { %1163 = vst [vmem:[%s2413_s16 + $0x20] sm:$0xff] %v1032_v33  ;;  %1165 = vst [vmem:[%s2413_s16 + $0x30] sm:$0xff] %v1115_v45 }
 0x290   : > { %1164 = vst [vmem:[%s2413_s16 + $0x28] sm:$0xff] %v1034_v6  ;;  %1166 = vst [vmem:[%s2413_s16 + $0x38] sm:$0xff] %v1117_v44 }
 0x292   : > { %v1037_v8 = vpop.f32.mrb[4].mxu0  ;;  %v1120_v9 = vpop.f32.mrb[4].mxu1 }
 0x293   : > { %v1038_v46 = vadd.f32 %v1037_v8, %v2400_v32  ;;  %v1121_v51 = vadd.f32 %v1120_v9, %v2402_v23  ;;  %v1039_v52 = vpop.f32.mrb[5].mxu0  ;;  %v1122_v48 = vpop.f32.mrb[5].mxu1 }
 0x294   : > { %v1040_v12 = vadd.f32 %v1039_v52, %v2405_v26  ;;  %v1123_v13 = vadd.f32 %v1122_v48, %v2407_v34  ;;  %v1041_v47 = vpop.f32.mrb[6].mxu0  ;;  %v1124_v53 = vpop.f32.mrb[6].mxu1 }
 0x295   : > { %1167 = vst [vmem:[%s2413_s16 + $0x40] sm:$0xff] %v1038_v46  ;;  %1169 = vst [vmem:[%s2413_s16 + $0x50] sm:$0xff] %v1121_v51  ;;  %v1042_v14 = vadd.f32 %v1041_v47, %v2400_v32  ;;  %v1125_v15 = vadd.f32 %v1124_v53, %v2402_v23  ;;  %v1043_v55 = vpop.f32.mrb[7].mxu0  ;;  %v1126_v27 = vpop.f32.mrb[7].mxu1 }
 0x296   : > { %1168 = vst [vmem:[%s2413_s16 + $0x48] sm:$0xff] %v1040_v12  ;;  %1170 = vst [vmem:[%s2413_s16 + $0x58] sm:$0xff] %v1123_v13  ;;  %v1044_v56 = vadd.f32 %v1043_v55, %v2405_v26  ;;  %v1127_v54 = vadd.f32 %v1126_v27, %v2407_v34 }
 0x297   : > { %1171 = vst [vmem:[%s2413_s16 + $0x60] sm:$0xff] %v1042_v14  ;;  %1173 = vst [vmem:[%s2413_s16 + $0x70] sm:$0xff] %v1125_v15 }
 0x298   : > { %1172 = vst [vmem:[%s2413_s16 + $0x68] sm:$0xff] %v1044_v56  ;;  %1174 = vst [vmem:[%s2413_s16 + $0x78] sm:$0xff] %v1127_v54 }
 0x29a   : > { %v1047_v59 = vpop.f32.mrb[8].mxu0  ;;  %v1130_v60 = vpop.f32.mrb[8].mxu1 }
 0x29b   : > { %v1048_v61 = vadd.f32 %v1047_v59, %v2400_v32  ;;  %v1131_v58 = vadd.f32 %v1130_v60, %v2402_v23  ;;  %v1049_v24 = vpop.f32.mrb[9].mxu0  ;;  %v1132_v62 = vpop.f32.mrb[9].mxu1 }
 0x29c   : > { %v1050_v16 = vadd.f32 %v1049_v24, %v2405_v26  ;;  %v1133_v57 = vadd.f32 %v1132_v62, %v2407_v34  ;;  %v1051_v17 = vpop.f32.mrb[10].mxu0  ;;  %v1134_v7 = vpop.f32.mrb[10].mxu1 }
 0x29d   : > { %1175 = vst [vmem:[%s2413_s16 + $0x80] sm:$0xff] %v1048_v61  ;;  %1177 = vst [vmem:[%s2413_s16 + $0x90] sm:$0xff] %v1131_v58  ;;  %v1052_v63 = vadd.f32 %v1051_v17, %v2400_v32  ;;  %v1135_v19 = vadd.f32 %v1134_v7, %v2402_v23  ;;  %v1053_v3 = vpop.f32.mrb[11].mxu0  ;;  %v1136_v35 = vpop.f32.mrb[11].mxu1 }
 0x29e   : > { %1176 = vst [vmem:[%s2413_s16 + $0x88] sm:$0xff] %v1050_v16  ;;  %1178 = vst [vmem:[%s2413_s16 + $0x98] sm:$0xff] %v1133_v57  ;;  %v1054_v4 = vadd.f32 %v1053_v3, %v2405_v26  ;;  %v1137_v20 = vadd.f32 %v1136_v35, %v2407_v34 }
 0x29f   : > { %1179 = vst [vmem:[%s2413_s16 + $0xa0] sm:$0xff] %v1052_v63  ;;  %1181 = vst [vmem:[%s2413_s16 + $0xb0] sm:$0xff] %v1135_v19 }
 0x2a0   : > { %1180 = vst [vmem:[%s2413_s16 + $0xa8] sm:$0xff] %v1054_v4  ;;  %1182 = vst [vmem:[%s2413_s16 + $0xb8] sm:$0xff] %v1137_v20 }
 0x2a2   : > { %v1057_v18 = vpop.f32.mrb[12].mxu0  ;;  %v1140_v11 = vpop.f32.mrb[12].mxu1 }
 0x2a3   : > { %v1058_v29 = vadd.f32 %v1057_v18, %v2400_v32  ;;  %v1141_v28 = vadd.f32 %v1140_v11, %v2402_v23  ;;  %v1059_v21 = vpop.f32.mrb[13].mxu0  ;;  %v1142_v30 = vpop.f32.mrb[13].mxu1 }
 0x2a4   : > { %v1060_v41 = vadd.f32 %v1059_v21, %v2405_v26  ;;  %v1143_v42 = vadd.f32 %v1142_v30, %v2407_v34  ;;  %v1061_v49 = vpop.f32.mrb[14].mxu0  ;;  %v1144_v50 = vpop.f32.mrb[14].mxu1 }
 0x2a5   : > { %1183 = vst [vmem:[%s2413_s16 + $0xc0] sm:$0xff] %v1058_v29  ;;  %1185 = vst [vmem:[%s2413_s16 + $0xd0] sm:$0xff] %v1141_v28  ;;  %v1062_v22 = vadd.f32 %v1061_v49, %v2400_v32  ;;  %v1145_v31 = vadd.f32 %v1144_v50, %v2402_v23  ;;  %v1063_v0 = vpop.f32.mrb[15].mxu0  ;;  %v1146_v1 = vpop.f32.mrb[15].mxu1 }
 0x2a6   : > { %1184 = vst [vmem:[%s2413_s16 + $0xc8] sm:$0xff] %v1060_v41  ;;  %1186 = vst [vmem:[%s2413_s16 + $0xd8] sm:$0xff] %v1143_v42  ;;  %v1064_v2 = vadd.f32 %v1063_v0, %v2405_v26  ;;  %v1147_v36 = vadd.f32 %v1146_v1, %v2407_v34 }
 0x2a7   : > { %1187 = vst [vmem:[%s2413_s16 + $0xe0] sm:$0xff] %v1062_v22  ;;  %1189 = vst [vmem:[%s2413_s16 + $0xf0] sm:$0xff] %v1145_v31 }
 0x2a8   : > { %1188 = vst [vmem:[%s2413_s16 + $0xe8] sm:$0xff] %v1064_v2  ;;  %1190 = vst [vmem:[%s2413_s16 + $0xf8] sm:$0xff] %v1147_v36 }
 0x2aa   : > { %v1067_v39 = vpop.f32.mrb[16].mxu0  ;;  %v1150_v37 = vpop.f32.mrb[16].mxu1 }
 0x2ab   : > { %v1068_v10 = vadd.f32 %v1067_v39, %v2400_v32  ;;  %v1151_v25 = vadd.f32 %v1150_v37, %v2402_v23  ;;  %v1069_v38 = vpop.f32.mrb[17].mxu0  ;;  %v1152_v40 = vpop.f32.mrb[17].mxu1 }
 0x2ac   : > { %v1070_v33 = vadd.f32 %v1069_v38, %v2405_v26  ;;  %v1153_v45 = vadd.f32 %v1152_v40, %v2407_v34  ;;  %v1071_v43 = vpop.f32.mrb[18].mxu0  ;;  %v1154_v5 = vpop.f32.mrb[18].mxu1 }
 0x2ad   : > { %1191 = vst [vmem:[%s2413_s16 + $0x100] sm:$0xff] %v1068_v10  ;;  %1193 = vst [vmem:[%s2413_s16 + $0x110] sm:$0xff] %v1151_v25  ;;  %v1072_v6 = vadd.f32 %v1071_v43, %v2400_v32  ;;  %v1155_v44 = vadd.f32 %v1154_v5, %v2402_v23  ;;  %v1073_v8 = vpop.f32.mrb[19].mxu0  ;;  %v1156_v9 = vpop.f32.mrb[19].mxu1 }
 0x2ae   : > { %1192 = vst [vmem:[%s2413_s16 + $0x108] sm:$0xff] %v1070_v33  ;;  %1194 = vst [vmem:[%s2413_s16 + $0x118] sm:$0xff] %v1153_v45  ;;  %v1074_v46 = vadd.f32 %v1073_v8, %v2405_v26  ;;  %v1157_v51 = vadd.f32 %v1156_v9, %v2407_v34 }
 0x2af   : > { %1195 = vst [vmem:[%s2413_s16 + $0x120] sm:$0xff] %v1072_v6  ;;  %1197 = vst [vmem:[%s2413_s16 + $0x130] sm:$0xff] %v1155_v44 }
 0x2b0   : > { %1196 = vst [vmem:[%s2413_s16 + $0x128] sm:$0xff] %v1074_v46  ;;  %1198 = vst [vmem:[%s2413_s16 + $0x138] sm:$0xff] %v1157_v51 }
 0x2b1   : > { %1773 = shalt.err (!%p1770_p1)
}
 0x2b2   : > { %s1774_s2 = scalar_lea.hbm %s2488_s26, 5120  ;;  %s1778_s30 = scalar_lea.hbm %s2547_s5, 10240 }
 0x2b3   : > { %p1775_p11 = scmp.ne.s32.totalorder %s2488_s26, %s1774_s2  ;;  %p1779_p8 = scmp.lt.u32.totalorder %s2488_s26, %s2547_s5 }
 0x2b4   : > { %p1780_p5 = scmp.lt.u32.totalorder %s1778_s30, %s1774_s2  ;;  %p1782_p2 = scmp.lt.u32.totalorder %s1774_s2, %s2488_s26 }
 0x2b5   : > { %p1776_p7 = pnand %p1775_p11, %p2572_p4 }
 0x2b6   : > { %p1781_p10 = por %p1780_p5, %p1779_p8 }
 0x2b7   : > { %p1777_p3 = pneg %p1776_p7 }
 0x2b8   : > { %p1783_p0 = por %p1782_p2, %p1781_p10 }
 0x2ba   : > { %p1784_p9 = pnand %p1783_p0, %p1777_p3 }
 0x2bc   : > { %1787 = shalt.err (!%p1784_p9)
}
 0x2bd   : > { %s1845_s29 = smov 512   ;;  %s1846_s16 = smov 32  }
 0x2be   : > { %1462 = dma.vmem_to_hbm [thread:$0]  (%p2572_p4), %s2494_s28, 5120, %s2488_s26, %s1200_s7, %s1845_s29, %s1845_s29, %s1846_s16  }
 0x2bf PF: > { %s1251_s20 = sand.u32 1, %s1822_s21   ;;  %p2573_p6 = scmp.ne.s32.totalorder %s2561_s10, 0 }
 0x2c0   : > { %p2574_p12 = scmp.ge.s32.totalorder %s1834_s24, 2  ;;  %s1252_s25 = scalar_lea.sflag [#allocation4], %s1251_s20 }
 0x2c2   : > { %p1478_p13 = pnand %p2574_p12, %p2573_p6 }
 0x2c4   : > { %1813 = dma.done.wait (!%p1478_p13), %s1252_s25, 5120  }
 0x2c5   : > { %1815 = vsyncadd (!%p1478_p13), %s1252_s25, 4294962176  ;;  %s1261_s19 = scalar_lea.sflag [#allocation10], %s1251_s20 }
 0x2c6   : > { %1817 = dma.done.wait (!%p1478_p13), %s1261_s19, 2560  }
 0x2c7   : > { %1819 = vsyncadd (!%p1478_p13), %s1261_s19, 4294964736  ;;  %s2575_s13 = sld [smem:[#allocation15_spill]]  ;;  %s2576_s23 = sld [smem:[#allocation16_spill]] }
 0x2c8   : > { %p24_p4 = scmp.ge.s32.totalorder %s1907_s27, 4   ;;  %s2577_s21 = smov %s1826_s22 }
 0x2c9   : > { %s2579_s24 = smov %s1907_s27 }
 0x2ca   :  { %26 = sbr.rel (!%p24_p4) target bundleno = 10 (0xa), region = 110 }
 0x2cd   : > { %s2578_s22 = smov %s2575_s13 }
 0x2d1   :  { %1266 = vsyncpa [#allocation3], 1 }
 0x2d2   :  { %1268 = vsyncpa [#allocation3 + $0x1], 1 }
 0x2d3   :  { %1269 = vsyncpa [#allocation6], 1 }
 0x2d4   :  { %1270 = vsyncpa [#allocation4], 1 }
 0x2d5   :  { %1272 = vsyncpa [#allocation4 + $0x1], 1 }
 0x2d6   :  { %1273 = vsyncpa [#allocation10], 1 }
 0x2d7   :  { %1275 = vsyncpa [#allocation10 + $0x1], 1 }

</bundles_post_ra>
